<compile_context>
chip_gen: v6e
topology: v6e:2x2x1
jax: 0.10.0
libtpu: 0.0.40
codegen_flags: <defaults>
</compile_context>

<pallas_src>
import functools

import numpy as np
import jax
import jax.numpy as jnp
from jax import lax
from jax.experimental import pallas as pl
from jax.experimental.pallas import tpu as pltpu

_EPS = 1e-5
_LANE = 128


def _ru(x, m):
    return (x + m - 1) // m * m


def _cparams():
    # Single data-parallel grid axis; explicit VMEM budget with headroom.
    return pltpu.CompilerParams(
        dimension_semantics=("parallel",),
        vmem_limit_bytes=48 * 1024 * 1024,
    )


# ---------------------------------------------------------------------------
# Kernels
# ---------------------------------------------------------------------------
def _partial_stats(v, tm, m_true):
    """Per-tile [sum, sum(v^2)] over valid rows (global row index < m_true)."""
    gidx = pl.program_id(0) * tm + lax.broadcasted_iota(jnp.int32, (tm, 1), 0)
    vm = jnp.where(gidx < m_true, v, 0.0)
    s = jnp.sum(vm, axis=0, keepdims=True)
    ss = jnp.sum(vm * vm, axis=0, keepdims=True)
    return jnp.concatenate([s, ss], axis=0)[None]          # (1, 2, C)


def _stats_kernel(m_true, x_ref, st_ref):
    """BN1 statistics of the block input x (partial sums per M-tile)."""
    st_ref[...] = _partial_stats(x_ref[...], x_ref.shape[0], m_true)


def _bnrelu_conv1x1_kernel(m_true, x_ref, sc_ref, sh_ref, w_ref, b_ref,
                           h_ref, st_ref):
    """h = ReLU(x*scale+shift) @ W + b, plus partial stats of h for the next BN."""
    a = jnp.maximum(x_ref[...] * sc_ref[...] + sh_ref[...], 0.0)
    h = jnp.dot(a.astype(jnp.bfloat16), w_ref[...],
                preferred_element_type=jnp.float32) + b_ref[...]
    h_ref[...] = h
    st_ref[...] = _partial_stats(h, x_ref.shape[0], m_true)


def _bnrelu_conv3x3_kernel(h1_ref, sc_ref, sh_ref, w_ref, b_ref,
                           h2_ref, st_ref):
    """Per-image 3x3 conv via im2col: one (H*W, 9*CHp) x (9*CHp, CHp) matmul."""
    _, hp2, wp2, chp = h1_ref.shape
    h, w = hp2 - 2, wp2 - 2
    # BN+ReLU on the spatially pre-padded block, then zero the 1-pixel border
    # (the conv's zero padding applies AFTER BN+ReLU).
    a = jnp.maximum(h1_ref[0] * sc_ref[...] + sh_ref[...], 0.0)
    rr = lax.broadcasted_iota(jnp.int32, (hp2, wp2, 1), 0)
    cc = lax.broadcasted_iota(jnp.int32, (hp2, wp2, 1), 1)
    interior = (rr >= 1) & (rr <= h) & (cc >= 1) & (cc <= w)
    a = jnp.where(interior, a, 0.0).astype(jnp.bfloat16)
    # im2col: 9 shifted views concatenated along the (lane) channel dim.
    taps = [a[dy:dy + h, dx:dx + w, :] for dy in range(3) for dx in range(3)]
    col = jnp.concatenate(taps, axis=-1).reshape(h * w, 9 * chp)
    h2 = jnp.dot(col, w_ref[...], preferred_element_type=jnp.float32) + b_ref[...]
    h2_ref[...] = h2[None]
    # Partial stats for BN3 (all rows of this image are valid).
    s = jnp.sum(h2, axis=0, keepdims=True)
    ss = jnp.sum(h2 * h2, axis=0, keepdims=True)
    st_ref[...] = jnp.concatenate([s, ss], axis=0)[None]


def _bnrelu_conv1x1_res_kernel(h_ref, x_ref, sc_ref, sh_ref, w_ref, b_ref,
                               o_ref):
    """out = ReLU(h*scale+shift) @ W + b + x   (identity shortcut)."""
    a = jnp.maximum(h_ref[...] * sc_ref[...] + sh_ref[...], 0.0)
    y = jnp.dot(a.astype(jnp.bfloat16), w_ref[...],
                preferred_element_type=jnp.float32) + b_ref[...]
    o_ref[...] = y + x_ref[...]


# ---------------------------------------------------------------------------
# Wrapper
# ---------------------------------------------------------------------------
def _finalize_bn(partials, count, gamma_p, beta_p):
    """Reduce per-tile [sum, sumsq] partials -> BN (scale, shift) in f32."""
    tot = jnp.sum(partials, axis=0)                       # (2, C)
    mean = tot[0] / count
    var = jnp.maximum(tot[1] / count - mean * mean, 0.0)  # E[x^2] - mean^2
    scale = gamma_p * lax.rsqrt(var + _EPS)               # (1, C)
    shift = beta_p - mean * scale
    return scale, shift


def bottleneck_block_forward(x_nchw, torch_params, *, tm=512):
    """torch_params = (g1,b1,w1[OIHW],cb1, g2,b2,w2[OIHW],cb2, g3,b3,w3[OIHW],cb3)
    for the projection_shortcut=None, strides=1 bottleneck block."""
    (g1, b1, w1, cb1, g2, b2, w2, cb2, g3, b3, w3, cb3) = torch_params
    N, C, H, W = x_nchw.shape
    CH = w1.shape[0]                       # hidden channels = filters // 4
    Cp, CHp = _ru(C, _LANE), _ru(CH, _LANE)
    M = N * H * W
    TM = min(tm, _ru(M, 8))
    Mp = _ru(M, TM)
    nt = Mp // TM
    f32 = jnp.float32
    bf16 = jnp.bfloat16

    # ---- layout / padding glue (cheap one-off XLA ops) ----------------------
    x2d = jnp.transpose(x_nchw, (0, 2, 3, 1)).reshape(M, C).astype(f32)
    x2d_p = jnp.zeros((Mp, Cp), f32).at[:M, :C].set(x2d)

    def vec(v, n):                                        # (1, n), zero padded
        return jnp.zeros((1, n), f32).at[0, :v.shape[0]].set(v.astype(f32))

    g1p, b1p, cb1p = vec(g1, Cp), vec(b1, Cp), vec(cb1, CHp)
    g2p, b2p, cb2p = vec(g2, CHp), vec(b2, CHp), vec(cb2, CHp)
    g3p, b3p, cb3p = vec(g3, CHp), vec(b3, CHp), vec(cb3, Cp)

    # Conv weights -> matmul layout, zero-padded, bf16 (MXU operands).
    w1p = jnp.zeros((Cp, CHp), bf16).at[:C, :CH].set(
        jnp.transpose(w1[:, :, 0, 0], (1, 0)).astype(bf16))
    w3p = jnp.zeros((CHp, Cp), bf16).at[:CH, :C].set(
        jnp.transpose(w3[:, :, 0, 0], (1, 0)).astype(bf16))
    w2p = (jnp.zeros((3, 3, CHp, CHp), bf16)
           .at[:, :, :CH, :CH]
           .set(jnp.transpose(w2, (2, 3, 1, 0)).astype(bf16))   # (ky,kx,I,O)
           .reshape(9 * CHp, CHp))

    cp = _cparams()
    row = lambda c: pl.BlockSpec((TM, c), lambda i: (i, 0))
    const = lambda shape: pl.BlockSpec(shape, lambda i: (0,) * len(shape))
    stat = lambda c: pl.BlockSpec((1, 2, c), lambda i: (i, 0, 0))

    # ---- BN1 statistics of x -------------------------------------------------
    st1 = pl.pallas_call(
        functools.partial(_stats_kernel, M),
        grid=(nt,),
        in_specs=[row(Cp)],
        out_specs=stat(Cp),
        out_shape=jax.ShapeDtypeStruct((nt, 2, Cp), f32),
        compiler_params=cp,
    )(x2d_p)
    sc1, sh1 = _finalize_bn(st1, M, g1p, b1p)

    # ---- stage 1: BN1+ReLU -> 1x1 conv (C -> CH), emit BN2 partials ----------
    h1_p, st2 = pl.pallas_call(
        functools.partial(_bnrelu_conv1x1_kernel, M),
        grid=(nt,),
        in_specs=[row(Cp), const((1, Cp)), const((1, Cp)),
                  const((Cp, CHp)), const((1, CHp))],
        out_specs=[row(CHp), stat(CHp)],
        out_shape=(jax.ShapeDtypeStruct((Mp, CHp), f32),
                   jax.ShapeDtypeStruct((nt, 2, CHp), f32)),
        compiler_params=cp,
    )(x2d_p, sc1, sh1, w1p, cb1p)
    sc2, sh2 = _finalize_bn(st2, M, g2p, b2p)

    # ---- stage 2: BN2+ReLU -> 3x3 conv (CH -> CH), per-image im2col ----------
    # TODO(synk): for very large H*W, tile H inside the image with halo rows.
    h1_pad = jnp.pad(h1_p[:M].reshape(N, H, W, CHp),
                     ((0, 0), (1, 1), (1, 1), (0, 0)))
    h2_img, st3 = pl.pallas_call(
        _bnrelu_conv3x3_kernel,
        grid=(N,),
        in_specs=[pl.BlockSpec((1, H + 2, W + 2, CHp), lambda n: (n, 0, 0, 0)),
                  const((1, CHp)), const((1, CHp)),
                  const((9 * CHp, CHp)), const((1, CHp))],
        out_specs=[pl.BlockSpec((1, H * W, CHp), lambda n: (n, 0, 0)),
                   pl.BlockSpec((1, 2, CHp), lambda n: (n, 0, 0))],
        out_shape=(jax.ShapeDtypeStruct((N, H * W, CHp), f32),
                   jax.ShapeDtypeStruct((N, 2, CHp), f32)),
        compiler_params=cp,
    )(h1_pad, sc2, sh2, w2p, cb2p)
    sc3, sh3 = _finalize_bn(st3, M, g3p, b3p)

    # ---- stage 3: BN3+ReLU -> 1x1 conv (CH -> C) + identity shortcut ---------
    h2_p = jnp.zeros((Mp, CHp), f32).at[:M].set(h2_img.reshape(M, CHp))
    out_p = pl.pallas_call(
        _bnrelu_conv1x1_res_kernel,
        grid=(nt,),
        in_specs=[row(CHp), row(Cp), const((1, CHp)), const((1, CHp)),
                  const((CHp, Cp)), const((1, Cp))],
        out_specs=row(Cp),
        out_shape=jax.ShapeDtypeStruct((Mp, Cp), f32),
        compiler_params=cp,
    )(h2_p, x2d_p, sc3, sh3, w3p, cb3p)

    out = out_p[:M, :C].reshape(N, H, W, C)
    return jnp.transpose(out, (0, 3, 1, 2))


# ---------------------------------------------------------------------------
# Pure-JAX reference (PyTorch-layout weights) for validation
# ---------------------------------------------------------------------------
def reference_nchw(x, torch_params):
    (g1, b1, w1, cb1, g2, b2, w2, cb2, g3, b3, w3, cb3) = torch_params
    dn = ("NCHW", "OIHW", "NCHW")

    def bnr(v, g, b):
        mean = v.mean(axis=(0, 2, 3), keepdims=True)
        var = ((v - mean) ** 2).mean(axis=(0, 2, 3), keepdims=True)
        y = (v - mean) / jnp.sqrt(var + _EPS) * g.reshape(1, -1, 1, 1) \
            + b.reshape(1, -1, 1, 1)
        return jnp.maximum(y, 0.0)

    h = bnr(x, g1, b1)
    h = lax.conv_general_dilated(h, w1, (1, 1), "VALID",
                                 dimension_numbers=dn) + cb1.reshape(1, -1, 1, 1)
    h = bnr(h, g2, b2)
    h = lax.conv_general_dilated(h, w2, (1, 1), ((1, 1), (1, 1)),
                                 dimension_numbers=dn) + cb2.reshape(1, -1, 1, 1)
    h = bnr(h, g3, b3)
    h = lax.conv_general_dilated(h, w3, (1, 1), "VALID",
                                 dimension_numbers=dn) + cb3.reshape(1, -1, 1, 1)
    return h + x


if __name__ == "__main__":
    # filters = 32 -> hidden = 8; batch 2, spatial 8x8.
    N, C, H, W = 2, 32, 8, 8
    CH = C // 4

    key = jax.random.PRNGKey(0)
    ks = jax.random.split(key, 13)
    x = jax.random.normal(ks[0], (N, C, H, W), jnp.float32)

    g1 = 1.0 + 0.1 * jax.random.normal(ks[1], (C,), jnp.float32)
    b1 = 0.1 * jax.random.normal(ks[2], (C,), jnp.float32)
    w1 = 0.1 * jax.random.normal(ks[3], (CH, C, 1, 1), jnp.float32)
    cb1 = 0.1 * jax.random.normal(ks[4], (CH,), jnp.float32)
    g2 = 1.0 + 0.1 * jax.random.normal(ks[5], (CH,), jnp.float32)
    b2 = 0.1 * jax.random.normal(ks[6], (CH,), jnp.float32)
    w2 = 0.1 * jax.random.normal(ks[7], (CH, CH, 3, 3), jnp.float32)
    cb2 = 0.1 * jax.random.normal(ks[8], (CH,), jnp.float32)
    g3 = 1.0 + 0.1 * jax.random.normal(ks[9], (CH,), jnp.float32)
    b3 = 0.1 * jax.random.normal(ks[10], (CH,), jnp.float32)
    w3 = 0.1 * jax.random.normal(ks[11], (C, CH, 1, 1), jnp.float32)
    cb3 = 0.1 * jax.random.normal(ks[12], (C,), jnp.float32)

    torch_params = (g1, b1, w1, cb1, g2, b2, w2, cb2, g3, b3, w3, cb3)

    fwd = jax.jit(bottleneck_block_forward)
    out = jax.block_until_ready(fwd(x, torch_params))
    ref = jax.block_until_ready(reference_nchw(x, torch_params))

    # bf16 MXU operands (f32 accumulation) -> slightly looser tolerance.
    np.testing.assert_allclose(np.asarray(out), np.asarray(ref),
                               rtol=5e-2, atol=5e-2)

    # TODO(synk): BatchNorm running-mean/var (momentum) buffer updates are a
    # training-time side effect that does not affect the returned tensor.
    # TODO(synk): projection_shortcut / strides>1 branches are not exercised by
    # this identity-shortcut, stride-1 instantiation of the module.
    print("KERNEL_OK")
</pallas_src>

<mosaic_0001>
module attributes {stable_mosaic.version = 11 : i64} {
  func.func @_stats_kernel(%arg0: i32, %arg1: memref<128x128xf32, #tpu.memory_space<vmem>>, %arg2: memref<1x2x128xf32, #tpu.memory_space<vmem>>) attributes {dimension_semantics = [#tpu.dimension_semantics<parallel>], iteration_bounds = array<i64: 1>, scalar_prefetch = 0 : i64, scratch_operands = 0 : i64, tpu.core_type = #tpu.core_type<tc>, window_params = [{transform_indices = @transform_0, window_bounds = array<i64: 128, 128>}, {transform_indices = @transform_1, window_bounds = array<i64: 1, 2, 128>}]} {
    %c0 = arith.constant 0 : index
    %c0_0 = arith.constant 0 : index
    %0 = vector.load %arg1[%c0, %c0_0] : memref<128x128xf32, #tpu.memory_space<vmem>>, vector<128x128xf32>
    %c128_i32 = arith.constant 128 : i32
    %1 = arith.muli %arg0, %c128_i32 : i32
    %2 = tpu.iota {dimensions = array<i32: 0>} : vector<128x1xi32>
    %3 = vector.broadcast %1 : i32 to vector<128x1xi32>
    %4 = arith.addi %3, %2 : vector<128x1xi32>
    %c128_i32_1 = arith.constant 128 : i32
    %5 = vector.broadcast %c128_i32_1 : i32 to vector<128x1xi32>
    %6 = arith.cmpi slt, %4, %5 : vector<128x1xi32>
    %cst = arith.constant 0.000000e+00 : f32
    %7 = vector.shape_cast %6 : vector<128x1xi1> to vector<128x1xi1>
    %8 = vector.broadcast %7 : vector<128x1xi1> to vector<128x128xi1>
    %9 = vector.broadcast %cst : f32 to vector<128x128xf32>
    %10 = arith.select %8, %0, %9 : vector<128x128xi1>, vector<128x128xf32>
    %cst_2 = arith.constant dense<0.000000e+00> : vector<128xf32>
    %11 = vector.multi_reduction <add>, %10, %cst_2 [0] : vector<128x128xf32> to vector<128xf32>
    %12 = vector.shape_cast %11 : vector<128xf32> to vector<1x128xf32>
    %13 = arith.mulf %10, %10 : vector<128x128xf32>
    %cst_3 = arith.constant dense<0.000000e+00> : vector<128xf32>
    %14 = vector.multi_reduction <add>, %13, %cst_3 [0] : vector<128x128xf32> to vector<128xf32>
    %15 = vector.shape_cast %14 : vector<128xf32> to vector<1x128xf32>
    %16 = tpu.concatenate %12, %15 in 0 : vector<1x128xf32>, vector<1x128xf32> -> vector<2x128xf32>
    %17 = vector.shape_cast %16 : vector<2x128xf32> to vector<1x2x128xf32>
    %c0_4 = arith.constant 0 : index
    %c0_5 = arith.constant 0 : index
    %c0_6 = arith.constant 0 : index
    %18 = vector.load %arg2[%c0_4, %c0_5, %c0_6] : memref<1x2x128xf32, #tpu.memory_space<vmem>>, vector<1x2x128xf32>
    tpu.vector_store %arg2[%c0_4, %c0_5, %c0_6], %17 {strides = array<i32>} : memref<1x2x128xf32, #tpu.memory_space<vmem>>, vector<1x2x128xf32>,
    return
  }
  func.func @transform_0(%arg0: i32) -> (i32, i32) {
    %c0_i32 = arith.constant 0 : i32
    %c0_i32_0 = arith.constant 0 : i32
    return %arg0, %c0_i32 : i32, i32
  }
  func.func @transform_1(%arg0: i32) -> (i32, i32, i32) {
    %c0_i32 = arith.constant 0 : i32
    %c0_i32_0 = arith.constant 0 : i32
    %c0_i32_1 = arith.constant 0 : i32
    return %arg0, %c0_i32, %c0_i32_0 : i32, i32, i32
  }
}

module attributes {stable_mosaic.version = 11 : i64} {
  func.func @_bnrelu_conv1x1_kernel(%arg0: i32, %arg1: memref<128x128xf32, #tpu.memory_space<vmem>>, %arg2: memref<1x128xf32, #tpu.memory_space<vmem>>, %arg3: memref<1x128xf32, #tpu.memory_space<vmem>>, %arg4: memref<128x128xbf16, #tpu.memory_space<vmem>>, %arg5: memref<1x128xf32, #tpu.memory_space<vmem>>, %arg6: memref<128x128xf32, #tpu.memory_space<vmem>>, %arg7: memref<1x2x128xf32, #tpu.memory_space<vmem>>) attributes {dimension_semantics = [#tpu.dimension_semantics<parallel>], iteration_bounds = array<i64: 1>, scalar_prefetch = 0 : i64, scratch_operands = 0 : i64, tpu.core_type = #tpu.core_type<tc>, window_params = [{transform_indices = @transform_0, window_bounds = array<i64: 128, 128>}, {pipeline_mode = #tpu.pipeline_mode<synchronous>, transform_indices = @transform_1, window_bounds = array<i64: 1, 128>}, {pipeline_mode = #tpu.pipeline_mode<synchronous>, transform_indices = @transform_2, window_bounds = array<i64: 1, 128>}, {pipeline_mode = #tpu.pipeline_mode<synchronous>, transform_indices = @transform_3, window_bounds = array<i64: 128, 128>}, {pipeline_mode = #tpu.pipeline_mode<synchronous>, transform_indices = @transform_4, window_bounds = array<i64: 1, 128>}, {transform_indices = @transform_5, window_bounds = array<i64: 128, 128>}, {transform_indices = @transform_6, window_bounds = array<i64: 1, 2, 128>}]} {
    %c0 = arith.constant 0 : index
    %c0_0 = arith.constant 0 : index
    %0 = vector.load %arg1[%c0, %c0_0] : memref<128x128xf32, #tpu.memory_space<vmem>>, vector<128x128xf32>
    %c0_1 = arith.constant 0 : index
    %c0_2 = arith.constant 0 : index
    %1 = vector.load %arg2[%c0_1, %c0_2] : memref<1x128xf32, #tpu.memory_space<vmem>>, vector<1x128xf32>
    %2 = vector.broadcast %1 : vector<1x128xf32> to vector<128x128xf32>
    %3 = arith.mulf %0, %2 : vector<128x128xf32>
    %c0_3 = arith.constant 0 : index
    %c0_4 = arith.constant 0 : index
    %4 = vector.load %arg3[%c0_3, %c0_4] : memref<1x128xf32, #tpu.memory_space<vmem>>, vector<1x128xf32>
    %5 = vector.broadcast %4 : vector<1x128xf32> to vector<128x128xf32>
    %6 = arith.addf %3, %5 : vector<128x128xf32>
    %cst = arith.constant 0.000000e+00 : f32
    %7 = vector.broadcast %cst : f32 to vector<128x128xf32>
    %8 = arith.maximumf %6, %7 : vector<128x128xf32>
    %9 = arith.truncf %8 : vector<128x128xf32> to vector<128x128xbf16>
    %c0_5 = arith.constant 0 : index
    %c0_6 = arith.constant 0 : index
    %10 = vector.load %arg4[%c0_5, %c0_6] : memref<128x128xbf16, #tpu.memory_space<vmem>>, vector<128x128xbf16>
    %cst_7 = arith.constant dense<0.000000e+00> : vector<128x128xf32>
    %11 = tpu.matmul %9, %10, %cst_7 {dimension_numbers = #tpu.dot_dimension_numbers<[1], [0], [0], [1], [0, 0, 1, 1], [], []>} : vector<128x128xbf16>, vector<128x128xbf16>, vector<128x128xf32> -> vector<128x128xf32>
    %c0_8 = arith.constant 0 : index
    %c0_9 = arith.constant 0 : index
    %12 = vector.load %arg5[%c0_8, %c0_9] : memref<1x128xf32, #tpu.memory_space<vmem>>, vector<1x128xf32>
    %13 = vector.broadcast %12 : vector<1x128xf32> to vector<128x128xf32>
    %14 = arith.addf %11, %13 : vector<128x128xf32>
    %c0_10 = arith.constant 0 : index
    %c0_11 = arith.constant 0 : index
    %15 = vector.load %arg6[%c0_10, %c0_11] : memref<128x128xf32, #tpu.memory_space<vmem>>, vector<128x128xf32>
    tpu.vector_store %arg6[%c0_10, %c0_11], %14 {strides = array<i32>} : memref<128x128xf32, #tpu.memory_space<vmem>>, vector<128x128xf32>,
    %c128_i32 = arith.constant 128 : i32
    %16 = arith.muli %arg0, %c128_i32 : i32
    %17 = tpu.iota {dimensions = array<i32: 0>} : vector<128x1xi32>
    %18 = vector.broadcast %16 : i32 to vector<128x1xi32>
    %19 = arith.addi %18, %17 : vector<128x1xi32>
    %c128_i32_12 = arith.constant 128 : i32
    %20 = vector.broadcast %c128_i32_12 : i32 to vector<128x1xi32>
    %21 = arith.cmpi slt, %19, %20 : vector<128x1xi32>
    %cst_13 = arith.constant 0.000000e+00 : f32
    %22 = vector.shape_cast %21 : vector<128x1xi1> to vector<128x1xi1>
    %23 = vector.broadcast %22 : vector<128x1xi1> to vector<128x128xi1>
    %24 = vector.broadcast %cst_13 : f32 to vector<128x128xf32>
    %25 = arith.select %23, %14, %24 : vector<128x128xi1>, vector<128x128xf32>
    %cst_14 = arith.constant dense<0.000000e+00> : vector<128xf32>
    %26 = vector.multi_reduction <add>, %25, %cst_14 [0] : vector<128x128xf32> to vector<128xf32>
    %27 = vector.shape_cast %26 : vector<128xf32> to vector<1x128xf32>
    %28 = arith.mulf %25, %25 : vector<128x128xf32>
    %cst_15 = arith.constant dense<0.000000e+00> : vector<128xf32>
    %29 = vector.multi_reduction <add>, %28, %cst_15 [0] : vector<128x128xf32> to vector<128xf32>
    %30 = vector.shape_cast %29 : vector<128xf32> to vector<1x128xf32>
    %31 = tpu.concatenate %27, %30 in 0 : vector<1x128xf32>, vector<1x128xf32> -> vector<2x128xf32>
    %32 = vector.shape_cast %31 : vector<2x128xf32> to vector<1x2x128xf32>
    %c0_16 = arith.constant 0 : index
    %c0_17 = arith.constant 0 : index
    %c0_18 = arith.constant 0 : index
    %33 = vector.load %arg7[%c0_16, %c0_17, %c0_18] : memref<1x2x128xf32, #tpu.memory_space<vmem>>, vector<1x2x128xf32>
    tpu.vector_store %arg7[%c0_16, %c0_17, %c0_18], %32 {strides = array<i32>} : memref<1x2x128xf32, #tpu.memory_space<vmem>>, vector<1x2x128xf32>,
    return
  }
  func.func @transform_0(%arg0: i32) -> (i32, i32) {
    %c0_i32 = arith.constant 0 : i32
    %c0_i32_0 = arith.constant 0 : i32
    return %arg0, %c0_i32 : i32, i32
  }
  func.func @transform_1(%arg0: i32) -> (i32, i32) {
    %c0_i32 = arith.constant 0 : i32
    %c0_i32_0 = arith.constant 0 : i32
    %c0_i32_1 = arith.constant 0 : i32
    return %c0_i32, %c0_i32_0 : i32, i32
  }
  func.func @transform_2(%arg0: i32) -> (i32, i32) {
    %c0_i32 = arith.constant 0 : i32
    %c0_i32_0 = arith.constant 0 : i32
    %c0_i32_1 = arith.constant 0 : i32
    return %c0_i32, %c0_i32_0 : i32, i32
  }
  func.func @transform_3(%arg0: i32) -> (i32, i32) {
    %c0_i32 = arith.constant 0 : i32
    %c0_i32_0 = arith.constant 0 : i32
    %c0_i32_1 = arith.constant 0 : i32
    return %c0_i32, %c0_i32_0 : i32, i32
  }
  func.func @transform_4(%arg0: i32) -> (i32, i32) {
    %c0_i32 = arith.constant 0 : i32
    %c0_i32_0 = arith.constant 0 : i32
    %c0_i32_1 = arith.constant 0 : i32
    return %c0_i32, %c0_i32_0 : i32, i32
  }
  func.func @transform_5(%arg0: i32) -> (i32, i32) {
    %c0_i32 = arith.constant 0 : i32
    %c0_i32_0 = arith.constant 0 : i32
    return %arg0, %c0_i32 : i32, i32
  }
  func.func @transform_6(%arg0: i32) -> (i32, i32, i32) {
    %c0_i32 = arith.constant 0 : i32
    %c0_i32_0 = arith.constant 0 : i32
    %c0_i32_1 = arith.constant 0 : i32
    return %arg0, %c0_i32, %c0_i32_0 : i32, i32, i32
  }
}

module attributes {stable_mosaic.version = 11 : i64} {
  func.func @_bnrelu_conv3x3_kernel(%arg0: i32, %arg1: memref<1x10x10x128xf32, #tpu.memory_space<vmem>>, %arg2: memref<1x128xf32, #tpu.memory_space<vmem>>, %arg3: memref<1x128xf32, #tpu.memory_space<vmem>>, %arg4: memref<1152x128xbf16, #tpu.memory_space<vmem>>, %arg5: memref<1x128xf32, #tpu.memory_space<vmem>>, %arg6: memref<1x64x128xf32, #tpu.memory_space<vmem>>, %arg7: memref<1x2x128xf32, #tpu.memory_space<vmem>>) attributes {dimension_semantics = [#tpu.dimension_semantics<parallel>], iteration_bounds = array<i64: 2>, scalar_prefetch = 0 : i64, scratch_operands = 0 : i64, tpu.core_type = #tpu.core_type<tc>, window_params = [{transform_indices = @transform_0, window_bounds = array<i64: 1, 10, 10, 128>}, {pipeline_mode = #tpu.pipeline_mode<synchronous>, transform_indices = @transform_1, window_bounds = array<i64: 1, 128>}, {pipeline_mode = #tpu.pipeline_mode<synchronous>, transform_indices = @transform_2, window_bounds = array<i64: 1, 128>}, {pipeline_mode = #tpu.pipeline_mode<synchronous>, transform_indices = @transform_3, window_bounds = array<i64: 1152, 128>}, {pipeline_mode = #tpu.pipeline_mode<synchronous>, transform_indices = @transform_4, window_bounds = array<i64: 1, 128>}, {transform_indices = @transform_5, window_bounds = array<i64: 1, 64, 128>}, {transform_indices = @transform_6, window_bounds = array<i64: 1, 2, 128>}]} {
    %c0 = arith.constant 0 : index
    %c0_0 = arith.constant 0 : index
    %c0_1 = arith.constant 0 : index
    %c0_2 = arith.constant 0 : index
    %0 = vector.load %arg1[%c0, %c0_0, %c0_1, %c0_2] : memref<1x10x10x128xf32, #tpu.memory_space<vmem>>, vector<1x10x10x128xf32>
    %1 = vector.shape_cast %0 : vector<1x10x10x128xf32> to vector<10x10x128xf32>
    %c0_3 = arith.constant 0 : index
    %c0_4 = arith.constant 0 : index
    %2 = vector.load %arg2[%c0_3, %c0_4] : memref<1x128xf32, #tpu.memory_space<vmem>>, vector<1x128xf32>
    %3 = vector.shape_cast %2 : vector<1x128xf32> to vector<1x1x128xf32>
    %4 = vector.broadcast %3 : vector<1x1x128xf32> to vector<10x10x128xf32>
    %5 = arith.mulf %1, %4 : vector<10x10x128xf32>
    %c0_5 = arith.constant 0 : index
    %c0_6 = arith.constant 0 : index
    %6 = vector.load %arg3[%c0_5, %c0_6] : memref<1x128xf32, #tpu.memory_space<vmem>>, vector<1x128xf32>
    %7 = vector.shape_cast %6 : vector<1x128xf32> to vector<1x1x128xf32>
    %8 = vector.broadcast %7 : vector<1x1x128xf32> to vector<10x10x128xf32>
    %9 = arith.addf %5, %8 : vector<10x10x128xf32>
    %cst = arith.constant 0.000000e+00 : f32
    %10 = vector.broadcast %cst : f32 to vector<10x10x128xf32>
    %11 = arith.maximumf %9, %10 : vector<10x10x128xf32>
    %12 = tpu.iota {dimensions = array<i32: 0>} : vector<10x10x1xi32>
    %13 = tpu.iota {dimensions = array<i32: 1>} : vector<10x10x1xi32>
    %c1_i32 = arith.constant 1 : i32
    %14 = vector.broadcast %c1_i32 : i32 to vector<10x10x1xi32>
    %15 = arith.cmpi sge, %12, %14 : vector<10x10x1xi32>
    %c8_i32 = arith.constant 8 : i32
    %16 = vector.broadcast %c8_i32 : i32 to vector<10x10x1xi32>
    %17 = arith.cmpi sle, %12, %16 : vector<10x10x1xi32>
    %18 = arith.andi %15, %17 : vector<10x10x1xi1>
    %c1_i32_7 = arith.constant 1 : i32
    %19 = vector.broadcast %c1_i32_7 : i32 to vector<10x10x1xi32>
    %20 = arith.cmpi sge, %13, %19 : vector<10x10x1xi32>
    %21 = arith.andi %18, %20 : vector<10x10x1xi1>
    %c8_i32_8 = arith.constant 8 : i32
    %22 = vector.broadcast %c8_i32_8 : i32 to vector<10x10x1xi32>
    %23 = arith.cmpi sle, %13, %22 : vector<10x10x1xi32>
    %24 = arith.andi %21, %23 : vector<10x10x1xi1>
    %cst_9 = arith.constant 0.000000e+00 : f32
    %25 = vector.shape_cast %24 : vector<10x10x1xi1> to vector<10x10x1xi1>
    %26 = vector.broadcast %25 : vector<10x10x1xi1> to vector<10x10x128xi1>
    %27 = vector.broadcast %cst_9 : f32 to vector<10x10x128xf32>
    %28 = arith.select %26, %11, %27 : vector<10x10x128xi1>, vector<10x10x128xf32>
    %29 = arith.truncf %28 : vector<10x10x128xf32> to vector<10x10x128xbf16>
    %30 = vector.extract_strided_slice %29 {offsets = [0, 0, 0], sizes = [8, 8, 128], strides = [1, 1, 1]} : vector<10x10x128xbf16> to vector<8x8x128xbf16>
    %31 = vector.extract_strided_slice %29 {offsets = [0, 1, 0], sizes = [8, 8, 128], strides = [1, 1, 1]} : vector<10x10x128xbf16> to vector<8x8x128xbf16>
    %32 = vector.extract_strided_slice %29 {offsets = [0, 2, 0], sizes = [8, 8, 128], strides = [1, 1, 1]} : vector<10x10x128xbf16> to vector<8x8x128xbf16>
    %33 = vector.extract_strided_slice %29 {offsets = [1, 0, 0], sizes = [8, 8, 128], strides = [1, 1, 1]} : vector<10x10x128xbf16> to vector<8x8x128xbf16>
    %34 = vector.extract_strided_slice %29 {offsets = [1, 1, 0], sizes = [8, 8, 128], strides = [1, 1, 1]} : vector<10x10x128xbf16> to vector<8x8x128xbf16>
    %35 = vector.extract_strided_slice %29 {offsets = [1, 2, 0], sizes = [8, 8, 128], strides = [1, 1, 1]} : vector<10x10x128xbf16> to vector<8x8x128xbf16>
    %36 = vector.extract_strided_slice %29 {offsets = [2, 0, 0], sizes = [8, 8, 128], strides = [1, 1, 1]} : vector<10x10x128xbf16> to vector<8x8x128xbf16>
    %37 = vector.extract_strided_slice %29 {offsets = [2, 1, 0], sizes = [8, 8, 128], strides = [1, 1, 1]} : vector<10x10x128xbf16> to vector<8x8x128xbf16>
    %38 = vector.extract_strided_slice %29 {offsets = [2, 2, 0], sizes = [8, 8, 128], strides = [1, 1, 1]} : vector<10x10x128xbf16> to vector<8x8x128xbf16>
    %39 = tpu.concatenate %30, %31, %32, %33, %34, %35, %36, %37, %38 in 2 : vector<8x8x128xbf16>, vector<8x8x128xbf16>, vector<8x8x128xbf16>, vector<8x8x128xbf16>, vector<8x8x128xbf16>, vector<8x8x128xbf16>, vector<8x8x128xbf16>, vector<8x8x128xbf16>, vector<8x8x128xbf16> -> vector<8x8x1152xbf16>
    %40 = vector.shape_cast %39 : vector<8x8x1152xbf16> to vector<64x1152xbf16>
    %c0_10 = arith.constant 0 : index
    %c0_11 = arith.constant 0 : index
    %41 = vector.load %arg4[%c0_10, %c0_11] : memref<1152x128xbf16, #tpu.memory_space<vmem>>, vector<1152x128xbf16>
    %cst_12 = arith.constant dense<0.000000e+00> : vector<64x128xf32>
    %42 = tpu.matmul %40, %41, %cst_12 {dimension_numbers = #tpu.dot_dimension_numbers<[1], [0], [0], [1], [0, 0, 1, 1], [], []>} : vector<64x1152xbf16>, vector<1152x128xbf16>, vector<64x128xf32> -> vector<64x128xf32>
    %c0_13 = arith.constant 0 : index
    %c0_14 = arith.constant 0 : index
    %43 = vector.load %arg5[%c0_13, %c0_14] : memref<1x128xf32, #tpu.memory_space<vmem>>, vector<1x128xf32>
    %44 = vector.broadcast %43 : vector<1x128xf32> to vector<64x128xf32>
    %45 = arith.addf %42, %44 : vector<64x128xf32>
    %46 = vector.shape_cast %45 : vector<64x128xf32> to vector<1x64x128xf32>
    %c0_15 = arith.constant 0 : index
    %c0_16 = arith.constant 0 : index
    %c0_17 = arith.constant 0 : index
    %47 = vector.load %arg6[%c0_15, %c0_16, %c0_17] : memref<1x64x128xf32, #tpu.memory_space<vmem>>, vector<1x64x128xf32>
    tpu.vector_store %arg6[%c0_15, %c0_16, %c0_17], %46 {strides = array<i32>} : memref<1x64x128xf32, #tpu.memory_space<vmem>>, vector<1x64x128xf32>,
    %cst_18 = arith.constant dense<0.000000e+00> : vector<128xf32>
    %48 = vector.multi_reduction <add>, %45, %cst_18 [0] : vector<64x128xf32> to vector<128xf32>
    %49 = vector.shape_cast %48 : vector<128xf32> to vector<1x128xf32>
    %50 = arith.mulf %45, %45 : vector<64x128xf32>
    %cst_19 = arith.constant dense<0.000000e+00> : vector<128xf32>
    %51 = vector.multi_reduction <add>, %50, %cst_19 [0] : vector<64x128xf32> to vector<128xf32>
    %52 = vector.shape_cast %51 : vector<128xf32> to vector<1x128xf32>
    %53 = tpu.concatenate %49, %52 in 0 : vector<1x128xf32>, vector<1x128xf32> -> vector<2x128xf32>
    %54 = vector.shape_cast %53 : vector<2x128xf32> to vector<1x2x128xf32>
    %c0_20 = arith.constant 0 : index
    %c0_21 = arith.constant 0 : index
    %c0_22 = arith.constant 0 : index
    %55 = vector.load %arg7[%c0_20, %c0_21, %c0_22] : memref<1x2x128xf32, #tpu.memory_space<vmem>>, vector<1x2x128xf32>
    tpu.vector_store %arg7[%c0_20, %c0_21, %c0_22], %54 {strides = array<i32>} : memref<1x2x128xf32, #tpu.memory_space<vmem>>, vector<1x2x128xf32>,
    return
  }
  func.func @transform_0(%arg0: i32) -> (i32, i32, i32, i32) {
    %c0_i32 = arith.constant 0 : i32
    %c0_i32_0 = arith.constant 0 : i32
    %c0_i32_1 = arith.constant 0 : i32
    %c0_i32_2 = arith.constant 0 : i32
    return %arg0, %c0_i32, %c0_i32_0, %c0_i32_1 : i32, i32, i32, i32
  }
  func.func @transform_1(%arg0: i32) -> (i32, i32) {
    %c0_i32 = arith.constant 0 : i32
    %c0_i32_0 = arith.constant 0 : i32
    %c0_i32_1 = arith.constant 0 : i32
    return %c0_i32, %c0_i32_0 : i32, i32
  }
  func.func @transform_2(%arg0: i32) -> (i32, i32) {
    %c0_i32 = arith.constant 0 : i32
    %c0_i32_0 = arith.constant 0 : i32
    %c0_i32_1 = arith.constant 0 : i32
    return %c0_i32, %c0_i32_0 : i32, i32
  }
  func.func @transform_3(%arg0: i32) -> (i32, i32) {
    %c0_i32 = arith.constant 0 : i32
    %c0_i32_0 = arith.constant 0 : i32
    %c0_i32_1 = arith.constant 0 : i32
    return %c0_i32, %c0_i32_0 : i32, i32
  }
  func.func @transform_4(%arg0: i32) -> (i32, i32) {
    %c0_i32 = arith.constant 0 : i32
    %c0_i32_0 = arith.constant 0 : i32
    %c0_i32_1 = arith.constant 0 : i32
    return %c0_i32, %c0_i32_0 : i32, i32
  }
  func.func @transform_5(%arg0: i32) -> (i32, i32, i32) {
    %c0_i32 = arith.constant 0 : i32
    %c0_i32_0 = arith.constant 0 : i32
    %c0_i32_1 = arith.constant 0 : i32
    return %arg0, %c0_i32, %c0_i32_0 : i32, i32, i32
  }
  func.func @transform_6(%arg0: i32) -> (i32, i32, i32) {
    %c0_i32 = arith.constant 0 : i32
    %c0_i32_0 = arith.constant 0 : i32
    %c0_i32_1 = arith.constant 0 : i32
    return %arg0, %c0_i32, %c0_i32_0 : i32, i32, i32
  }
}

module attributes {stable_mosaic.version = 11 : i64} {
  func.func @_bnrelu_conv1x1_res_kernel(%arg0: i32, %arg1: memref<128x128xf32, #tpu.memory_space<vmem>>, %arg2: memref<128x128xf32, #tpu.memory_space<vmem>>, %arg3: memref<1x128xf32, #tpu.memory_space<vmem>>, %arg4: memref<1x128xf32, #tpu.memory_space<vmem>>, %arg5: memref<128x128xbf16, #tpu.memory_space<vmem>>, %arg6: memref<1x128xf32, #tpu.memory_space<vmem>>, %arg7: memref<128x128xf32, #tpu.memory_space<vmem>>) attributes {dimension_semantics = [#tpu.dimension_semantics<parallel>], iteration_bounds = array<i64: 1>, scalar_prefetch = 0 : i64, scratch_operands = 0 : i64, tpu.core_type = #tpu.core_type<tc>, window_params = [{transform_indices = @transform_0, window_bounds = array<i64: 128, 128>}, {transform_indices = @transform_1, window_bounds = array<i64: 128, 128>}, {pipeline_mode = #tpu.pipeline_mode<synchronous>, transform_indices = @transform_2, window_bounds = array<i64: 1, 128>}, {pipeline_mode = #tpu.pipeline_mode<synchronous>, transform_indices = @transform_3, window_bounds = array<i64: 1, 128>}, {pipeline_mode = #tpu.pipeline_mode<synchronous>, transform_indices = @transform_4, window_bounds = array<i64: 128, 128>}, {pipeline_mode = #tpu.pipeline_mode<synchronous>, transform_indices = @transform_5, window_bounds = array<i64: 1, 128>}, {transform_indices = @transform_6, window_bounds = array<i64: 128, 128>}]} {
    %c0 = arith.constant 0 : index
    %c0_0 = arith.constant 0 : index
    %0 = vector.load %arg1[%c0, %c0_0] : memref<128x128xf32, #tpu.memory_space<vmem>>, vector<128x128xf32>
    %c0_1 = arith.constant 0 : index
    %c0_2 = arith.constant 0 : index
    %1 = vector.load %arg3[%c0_1, %c0_2] : memref<1x128xf32, #tpu.memory_space<vmem>>, vector<1x128xf32>
    %2 = vector.broadcast %1 : vector<1x128xf32> to vector<128x128xf32>
    %3 = arith.mulf %0, %2 : vector<128x128xf32>
    %c0_3 = arith.constant 0 : index
    %c0_4 = arith.constant 0 : index
    %4 = vector.load %arg4[%c0_3, %c0_4] : memref<1x128xf32, #tpu.memory_space<vmem>>, vector<1x128xf32>
    %5 = vector.broadcast %4 : vector<1x128xf32> to vector<128x128xf32>
    %6 = arith.addf %3, %5 : vector<128x128xf32>
    %cst = arith.constant 0.000000e+00 : f32
    %7 = vector.broadcast %cst : f32 to vector<128x128xf32>
    %8 = arith.maximumf %6, %7 : vector<128x128xf32>
    %9 = arith.truncf %8 : vector<128x128xf32> to vector<128x128xbf16>
    %c0_5 = arith.constant 0 : index
    %c0_6 = arith.constant 0 : index
    %10 = vector.load %arg5[%c0_5, %c0_6] : memref<128x128xbf16, #tpu.memory_space<vmem>>, vector<128x128xbf16>
    %cst_7 = arith.constant dense<0.000000e+00> : vector<128x128xf32>
    %11 = tpu.matmul %9, %10, %cst_7 {dimension_numbers = #tpu.dot_dimension_numbers<[1], [0], [0], [1], [0, 0, 1, 1], [], []>} : vector<128x128xbf16>, vector<128x128xbf16>, vector<128x128xf32> -> vector<128x128xf32>
    %c0_8 = arith.constant 0 : index
    %c0_9 = arith.constant 0 : index
    %12 = vector.load %arg6[%c0_8, %c0_9] : memref<1x128xf32, #tpu.memory_space<vmem>>, vector<1x128xf32>
    %13 = vector.broadcast %12 : vector<1x128xf32> to vector<128x128xf32>
    %14 = arith.addf %11, %13 : vector<128x128xf32>
    %c0_10 = arith.constant 0 : index
    %c0_11 = arith.constant 0 : index
    %15 = vector.load %arg2[%c0_10, %c0_11] : memref<128x128xf32, #tpu.memory_space<vmem>>, vector<128x128xf32>
    %16 = arith.addf %14, %15 : vector<128x128xf32>
    %c0_12 = arith.constant 0 : index
    %c0_13 = arith.constant 0 : index
    %17 = vector.load %arg7[%c0_12, %c0_13] : memref<128x128xf32, #tpu.memory_space<vmem>>, vector<128x128xf32>
    tpu.vector_store %arg7[%c0_12, %c0_13], %16 {strides = array<i32>} : memref<128x128xf32, #tpu.memory_space<vmem>>, vector<128x128xf32>,
    return
  }
  func.func @transform_0(%arg0: i32) -> (i32, i32) {
    %c0_i32 = arith.constant 0 : i32
    %c0_i32_0 = arith.constant 0 : i32
    return %arg0, %c0_i32 : i32, i32
  }
  func.func @transform_1(%arg0: i32) -> (i32, i32) {
    %c0_i32 = arith.constant 0 : i32
    %c0_i32_0 = arith.constant 0 : i32
    return %arg0, %c0_i32 : i32, i32
  }
  func.func @transform_2(%arg0: i32) -> (i32, i32) {
    %c0_i32 = arith.constant 0 : i32
    %c0_i32_0 = arith.constant 0 : i32
    %c0_i32_1 = arith.constant 0 : i32
    return %c0_i32, %c0_i32_0 : i32, i32
  }
  func.func @transform_3(%arg0: i32) -> (i32, i32) {
    %c0_i32 = arith.constant 0 : i32
    %c0_i32_0 = arith.constant 0 : i32
    %c0_i32_1 = arith.constant 0 : i32
    return %c0_i32, %c0_i32_0 : i32, i32
  }
  func.func @transform_4(%arg0: i32) -> (i32, i32) {
    %c0_i32 = arith.constant 0 : i32
    %c0_i32_0 = arith.constant 0 : i32
    %c0_i32_1 = arith.constant 0 : i32
    return %c0_i32, %c0_i32_0 : i32, i32
  }
  func.func @transform_5(%arg0: i32) -> (i32, i32) {
    %c0_i32 = arith.constant 0 : i32
    %c0_i32_0 = arith.constant 0 : i32
    %c0_i32_1 = arith.constant 0 : i32
    return %c0_i32, %c0_i32_0 : i32, i32
  }
  func.func @transform_6(%arg0: i32) -> (i32, i32) {
    %c0_i32 = arith.constant 0 : i32
    %c0_i32_0 = arith.constant 0 : i32
    return %arg0, %c0_i32 : i32, i32
  }
}

</mosaic_0001>

<bundles_post_ra>
// kernel: bottleneck_block_forward.4
= control target key start
LH: loop header
LB: loop body
LE: loop exit
PB: predicated region body
PF: predicated region fallthrough
CT: control target
= control target key end

     0   :  { %vm181_vm0 = vcmask 1040384   ;;  %s249_s0 = inlined_call_operand.vmem [shape: f32[128,128], index: 0, kind: input, shape index: {}]   ;;  %s250_s1 = inlined_call_operand.vmem [shape: f32[1,2,128], index: 1, kind: output, shape index: {}]  }
   0x1   :  { %v8_v0 = vld [vmem:[%s249_s0] sm:$0xff]  ;;  %v9_v1 = vld [vmem:[%s249_s0 + $0x8] sm:$0xff]  ;;  %v10_v2 = vld [vmem:[%s249_s0 + $0x10] sm:$0xff] }
   0x2   :  { %v11_v3 = vld [vmem:[%s249_s0 + $0x18] sm:$0xff]  ;;  %v123_v4 = vadd.f32 %v9_v1, %v8_v0  ;;  %v144_v5 = vmul.f32 %v8_v0, %v8_v0  ;;  %v145_v6 = vmul.f32 %v9_v1, %v9_v1  ;;  %v146_v7 = vmul.f32 %v10_v2, %v10_v2  ;;  %v12_v8 = vld [vmem:[%s249_s0 + $0x20] sm:$0xff]  ;;  %v13_v12 = vld [vmem:[%s249_s0 + $0x28] sm:$0xff] }
   0x3   :  { %v147_v10 = vmul.f32 %v11_v3, %v11_v3  ;;  %v148_v14 = vmul.f32 %v12_v8, %v12_v8  ;;  %v14_v16 = vld [vmem:[%s249_s0 + $0x30] sm:$0xff]  ;;  %v149_v18 = vmul.f32 %v13_v12, %v13_v12  ;;  %v15_v20 = vld [vmem:[%s249_s0 + $0x38] sm:$0xff]  ;;  %v16_v24 = vld [vmem:[%s249_s0 + $0x40] sm:$0xff] }
   0x4   :  { %v124_v9 = vadd.f32 %v123_v4, %v10_v2  ;;  %v160_v11 = vadd.f32 %v145_v6, %v144_v5  ;;  %v150_v22 = vmul.f32 %v14_v16, %v14_v16  ;;  %v151_v26 = vmul.f32 %v15_v20, %v15_v20  ;;  %v17_v28 = vld [vmem:[%s249_s0 + $0x48] sm:$0xff]  ;;  %v18_v32 = vld [vmem:[%s249_s0 + $0x50] sm:$0xff]  ;;  %v19_v36 = vld [vmem:[%s249_s0 + $0x58] sm:$0xff] }
   0x5   :  { %v152_v30 = vmul.f32 %v16_v24, %v16_v24  ;;  %v153_v34 = vmul.f32 %v17_v28, %v17_v28  ;;  %v154_v38 = vmul.f32 %v18_v32, %v18_v32  ;;  %v20_v40 = vld [vmem:[%s249_s0 + $0x60] sm:$0xff]  ;;  %v155_v42 = vmul.f32 %v19_v36, %v19_v36  ;;  %v21_v44 = vld [vmem:[%s249_s0 + $0x68] sm:$0xff]  ;;  %v22_v48 = vld [vmem:[%s249_s0 + $0x70] sm:$0xff] }
   0x6   :  { %v125_v13 = vadd.f32 %v124_v9, %v11_v3  ;;  %v161_v15 = vadd.f32 %v160_v11, %v146_v7  ;;  %v156_v46 = vmul.f32 %v20_v40, %v20_v40  ;;  %v157_v50 = vmul.f32 %v21_v44, %v21_v44  ;;  %v23_v52 = vld [vmem:[%s249_s0 + $0x78] sm:$0xff] }
   0x7   :  { %v158_v54 = vmul.f32 %v22_v48, %v22_v48  ;;  %v159_v57 = vmul.f32 %v23_v52, %v23_v52 }
   0x8   :  { %v126_v17 = vadd.f32 %v125_v13, %v12_v8  ;;  %v162_v19 = vadd.f32 %v161_v15, %v147_v10 }
   0xa   :  { %v127_v21 = vadd.f32 %v126_v17, %v13_v12  ;;  %v163_v23 = vadd.f32 %v162_v19, %v148_v14 }
   0xc   :  { %v128_v25 = vadd.f32 %v127_v21, %v14_v16  ;;  %v164_v27 = vadd.f32 %v163_v23, %v149_v18 }
   0xe   :  { %v129_v29 = vadd.f32 %v128_v25, %v15_v20  ;;  %v165_v31 = vadd.f32 %v164_v27, %v150_v22 }
  0x10   :  { %v130_v33 = vadd.f32 %v129_v29, %v16_v24  ;;  %v166_v35 = vadd.f32 %v165_v31, %v151_v26 }
  0x12   :  { %v131_v37 = vadd.f32 %v130_v33, %v17_v28  ;;  %v167_v39 = vadd.f32 %v166_v35, %v152_v30 }
  0x14   :  { %v132_v41 = vadd.f32 %v131_v37, %v18_v32  ;;  %v168_v43 = vadd.f32 %v167_v39, %v153_v34 }
  0x16   :  { %v133_v45 = vadd.f32 %v132_v41, %v19_v36  ;;  %v169_v47 = vadd.f32 %v168_v43, %v154_v38 }
  0x18   :  { %v134_v49 = vadd.f32 %v133_v45, %v20_v40  ;;  %v170_v51 = vadd.f32 %v169_v47, %v155_v42 }
  0x1a   :  { %v135_v53 = vadd.f32 %v134_v49, %v21_v44  ;;  %v171_v55 = vadd.f32 %v170_v51, %v156_v46 }
  0x1c   :  { %v136_v56 = vadd.f32 %v135_v53, %v22_v48  ;;  %v172_v58 = vadd.f32 %v171_v55, %v157_v50 }
  0x1e   :  { %v137_v59 = vadd.f32 %v136_v56, %v23_v52  ;;  %v173_v60 = vadd.f32 %v172_v58, %v158_v54 }
  0x20   :  { %v138_v61 = vrot.slane %v137_v59, 4  ;;  %v174_v62 = vadd.f32 %v173_v60, %v159_v57 }
  0x22   :  { %v139_v63 = vadd.f32 %v138_v61, %v137_v59  ;;  %v175_v0 = vrot.slane %v174_v62, 4 }
  0x24   :  { %v140_v1 = vrot.slane %v139_v63, 2  ;;  %v176_v2 = vadd.f32 %v175_v0, %v174_v62 }
  0x26   :  { %v141_v3 = vadd.f32 %v140_v1, %v139_v63  ;;  %v177_v4 = vrot.slane %v176_v2, 2 }
  0x28   :  { %v142_v5 = vrot.slane %v141_v3, 1  ;;  %v178_v6 = vadd.f32 %v177_v4, %v176_v2 }
  0x2a   :  { %v143_v7 = vadd.f32 %v142_v5, %v141_v3  ;;  %v179_v8 = vrot.slane %v178_v6, 1 }
  0x2c   :  { %v180_v9 = vadd.f32 %v179_v8, %v178_v6 }
  0x2e   :  { %v182_v10 = vsel %vm181_vm0, %v143_v7, %v180_v9 }
  0x2f   :  { %183 = vst [vmem:[%s250_s1] sm:$0x3] %v182_v10 }

// kernel: bottleneck_block_forward.5
= control target key start
LH: loop header
LB: loop body
LE: loop exit
PB: predicated region body
PF: predicated region fallthrough
CT: control target
= control target key end

     0   :  { %vm450_vm0 = vcmask 1040384   ;;  %s759_s3 = inlined_call_operand.vmem [shape: bf16[128,128], index: 3, kind: input, shape index: {}]   ;;  %s760_s0 = inlined_call_operand.vmem [shape: f32[128,128], index: 0, kind: input, shape index: {}]   ;;  %s761_s1 = inlined_call_operand.vmem [shape: f32[1,128], index: 1, kind: input, shape index: {}]   ;;  %s762_s2 = inlined_call_operand.vmem [shape: f32[1,128], index: 2, kind: input, shape index: {}]   ;;  %s763_s4 = inlined_call_operand.vmem [shape: f32[1,128], index: 4, kind: input, shape index: {}]   ;;  %s764_s5 = inlined_call_operand.vmem [shape: f32[128,128], index: 5, kind: output, shape index: {0}]   ;;  %s765_s6 = inlined_call_operand.vmem [shape: f32[1,2,128], index: 6, kind: output, shape index: {1}]  }
   0x1   :  { %v536_v0 = vld [vmem:[%s759_s3 + $0x38] sm:$0xff]   ;;  %v537_v1 = vld [vmem:[%s759_s3 + $0x30] sm:$0xff]   ;;  %v538_v2 = vld [vmem:[%s759_s3 + $0x28] sm:$0xff]  }
   0x2   :  { %488 = vmatprep.subr.bf16.mxu0 %v536_v0  ;;  %520 = vmatprep.subr.bf16.mxu1 %v536_v0  ;;  %v539_v3 = vld [vmem:[%s759_s3 + $0x20] sm:$0xff]   ;;  %v24_v5 = vld [vmem:[%s760_s0 + $0x8] sm:$0xff]  ;;  %v540_v12 = vld [vmem:[%s759_s3 + $0x18] sm:$0xff]  }
   0x3   :  { %489 = vmatpush3.bf16.msra.mxu0 %v536_v0  ;;  %528 = vmatpush3.bf16.msra.mxu1 %v536_v0  ;;  %v23_v4 = vld [vmem:[%s760_s0] sm:$0xff]  ;;  %v32_v16 = vld [vmem:[%s760_s0 + $0x48] sm:$0xff]  ;;  %v541_v17 = vld [vmem:[%s759_s3 + $0x10] sm:$0xff]  }
   0x4   :  { %490 = vmatprep.subr.bf16.mxu0 %v537_v1  ;;  %521 = vmatprep.subr.bf16.mxu1 %v537_v1  ;;  %v600_v6 = vld [vmem:[%s761_s1] ss:$0 sm:$0xff]  ;;  %v25_v18 = vld [vmem:[%s760_s0 + $0x10] sm:$0xff]  ;;  %v26_v19 = vld [vmem:[%s760_s0 + $0x18] sm:$0xff] }
   0x5   :  { %v46_v7 = vmul.f32 %v600_v6, %v23_v4  ;;  %v47_v8 = vmul.f32 %v600_v6, %v24_v5  ;;  %v607_v9 = vld [vmem:[%s762_s2] ss:$0 sm:$0xff]  ;;  %v33_v23 = vld [vmem:[%s760_s0 + $0x50] sm:$0xff]  ;;  %v34_v24 = vld [vmem:[%s760_s0 + $0x58] sm:$0xff]  ;;  %v55_v26 = vmul.f32 %v600_v6, %v32_v16  ;;  %v48_v29 = vmul.f32 %v600_v6, %v25_v18 }
   0x6   :  { %v31_v13 = vld [vmem:[%s760_s0 + $0x40] sm:$0xff]  ;;  %v28_v25 = vld [vmem:[%s760_s0 + $0x28] sm:$0xff]  ;;  %v49_v30 = vmul.f32 %v600_v6, %v26_v19  ;;  %v56_v34 = vmul.f32 %v600_v6, %v33_v23  ;;  %v57_v35 = vmul.f32 %v600_v6, %v34_v24  ;;  %v29_v45 = vld [vmem:[%s760_s0 + $0x30] sm:$0xff] }
   0x7   :  { %491 = vmatpush3.bf16.msra.mxu0 %v537_v1  ;;  %529 = vmatpush3.bf16.msra.mxu1 %v537_v1  ;;  %v69_v10 = vadd.f32 %v607_v9, %v46_v7  ;;  %v70_v11 = vadd.f32 %v607_v9, %v47_v8  ;;  %v27_v21 = vld [vmem:[%s760_s0 + $0x20] sm:$0xff]  ;;  %v54_v22 = vmul.f32 %v600_v6, %v31_v13  ;;  %v36_v28 = vld [vmem:[%s760_s0 + $0x68] sm:$0xff]  ;;  %v30_v46 = vld [vmem:[%s760_s0 + $0x38] sm:$0xff] }
   0x8   :  { %492 = vmatprep.subr.bf16.mxu0 %v538_v2  ;;  %522 = vmatprep.subr.bf16.mxu1 %v538_v2  ;;  %v35_v27 = vld [vmem:[%s760_s0 + $0x60] sm:$0xff]  ;;  %v50_v32 = vmul.f32 %v600_v6, %v27_v21  ;;  %v78_v33 = vadd.f32 %v607_v9, %v55_v26  ;;  %v51_v36 = vmul.f32 %v600_v6, %v28_v25  ;;  %v542_v40 = vld [vmem:[%s759_s3 + $0x8] sm:$0xff]   ;;  %v37_v53 = vld [vmem:[%s760_s0 + $0x70] sm:$0xff] }
   0x9   :  { %v85_v14 = vmax.f32 %v69_v10, 0.0  ;;  %v86_v15 = vmax.f32 %v70_v11, 0.0  ;;  %v77_v31 = vadd.f32 %v607_v9, %v54_v22  ;;  %v58_v38 = vmul.f32 %v600_v6, %v35_v27  ;;  %v38_v54 = vld [vmem:[%s760_s0 + $0x78] sm:$0xff]  ;;  %v543_v55 = vld [vmem:[%s759_s3] sm:$0xff]  }
   0xa   :  { %v59_v39 = vmul.f32 %v600_v6, %v36_v28  ;;  %v94_v41 = vmax.f32 %v78_v33, 0.0  ;;  %v71_v42 = vadd.f32 %v607_v9, %v48_v29  ;;  %v72_v43 = vadd.f32 %v607_v9, %v49_v30 }
   0xb   :  { %493 = vmatpush3.bf16.msra.mxu0 %v538_v2  ;;  %530 = vmatpush3.bf16.msra.mxu1 %v538_v2  ;;  %v101_v20 = vpack.c.bf16 %v86_v15, %v85_v14  ;;  %v93_v37 = vmax.f32 %v77_v31, 0.0  ;;  %v73_v44 = vadd.f32 %v607_v9, %v50_v32  ;;  %v79_v48 = vadd.f32 %v607_v9, %v56_v34 }
   0xc   :  { %494 = vmatprep.subr.bf16.mxu0 %v539_v3  ;;  %523 = vmatprep.subr.bf16.mxu1 %v539_v3  ;;  %v80_v49 = vadd.f32 %v607_v9, %v57_v35  ;;  %v74_v50 = vadd.f32 %v607_v9, %v51_v36  ;;  %v81_v51 = vadd.f32 %v607_v9, %v58_v38  ;;  %v87_v56 = vmax.f32 %v71_v42, 0.0 }
   0xd   :  { %504 = vmatprep.mubr.bf16.mxu0 %v101_v20  ;;  %v105_v47 = vpack.c.bf16 %v94_v41, %v93_v37  ;;  %v82_v52 = vadd.f32 %v607_v9, %v59_v39  ;;  %v88_v57 = vmax.f32 %v72_v43, 0.0  ;;  %v52_v58 = vmul.f32 %v600_v6, %v29_v45 }
   0xe   :  { %v53_v59 = vmul.f32 %v600_v6, %v30_v46  ;;  %v95_v60 = vmax.f32 %v79_v48, 0.0  ;;  %v96_v61 = vmax.f32 %v80_v49, 0.0  ;;  %v60_v62 = vmul.f32 %v600_v6, %v37_v53 }
   0xf   :  { %495 = vmatpush3.bf16.msra.mxu0 %v539_v3  ;;  %531 = vmatpush3.bf16.msra.mxu1 %v539_v3  ;;  %v61_v63 = vmul.f32 %v600_v6, %v38_v54  ;;  %v89_v0 = vmax.f32 %v73_v44, 0.0  ;;  %v90_v1 = vmax.f32 %v74_v50, 0.0  ;;  %v97_v2 = vmax.f32 %v81_v51, 0.0 }
  0x10   :  { %496 = vmatprep.subr.bf16.mxu0 %v540_v12  ;;  %524 = vmatprep.subr.bf16.mxu1 %v540_v12  ;;  %v98_v3 = vmax.f32 %v82_v52, 0.0  ;;  %v102_v4 = vpack.c.bf16 %v88_v57, %v87_v56  ;;  %v75_v5 = vadd.f32 %v607_v9, %v52_v58  ;;  %v76_v7 = vadd.f32 %v607_v9, %v53_v59 }
  0x11   :  { %512 = vmatprep.mubr.bf16.mxu1 %v105_v47  ;;  %v106_v8 = vpack.c.bf16 %v96_v61, %v95_v60  ;;  %v83_v10 = vadd.f32 %v607_v9, %v60_v62  ;;  %v84_v11 = vadd.f32 %v607_v9, %v61_v63  ;;  %v103_v6 = vpack.c.bf16 %v90_v1, %v89_v0  ;;  %v463_v9 = vld [vmem:[%s763_s4] ss:$0 sm:$0xff] }
  0x12   :  { %v91_v13 = vmax.f32 %v75_v5, 0.0  ;;  %v92_v14 = vmax.f32 %v76_v7, 0.0 }
  0x13   :  { %497 = vmatpush3.bf16.msra.mxu0 %v540_v12  ;;  %532 = vmatpush3.bf16.msra.mxu1 %v540_v12  ;;  %v107_v12 = vpack.c.bf16 %v98_v3, %v97_v2  ;;  %v99_v15 = vmax.f32 %v83_v10, 0.0  ;;  %v100_v16 = vmax.f32 %v84_v11, 0.0 }
  0x14   :  { %498 = vmatprep.subr.bf16.mxu0 %v541_v17  ;;  %525 = vmatprep.subr.bf16.mxu1 %v541_v17 }
  0x15   :  { %v108_v18 = vpack.c.bf16 %v100_v16, %v99_v15 }
  0x17   :  { %499 = vmatpush3.bf16.msra.mxu0 %v541_v17  ;;  %533 = vmatpush3.bf16.msra.mxu1 %v541_v17  ;;  %v104_v17 = vpack.c.bf16 %v92_v14, %v91_v13 }
  0x18   :  { %500 = vmatprep.subr.bf16.mxu0 %v542_v40  ;;  %526 = vmatprep.subr.bf16.mxu1 %v542_v40 }
  0x1b   :  { %501 = vmatpush3.bf16.msra.mxu0 %v542_v40  ;;  %534 = vmatpush3.bf16.msra.mxu1 %v542_v40 }
  0x1c   :  { %502 = vmatprep.subr.bf16.mxu0 %v543_v55  ;;  %527 = vmatprep.subr.bf16.mxu1 %v543_v55 }
  0x1f   :  { %503 = vmatpush3.bf16.msra.mxu0 %v543_v55  ;;  %535 = vmatpush3.bf16.msra.mxu1 %v543_v55 }
  0x22   :  { %505 = vmatmul.mubr.bf16.vlgmr.msra.gmra.mxu0 %v102_v4  ;;  %513 = vmatmul.mubr.bf16.vlgmr.msra.gmra.mxu1 %v106_v8 }
  0x23   :  { %508 = vmatprep.mubr.bf16.mxu0 %v103_v6  ;;  %516 = vmatprep.mubr.bf16.mxu1 %v107_v12 }
  0x2a   :  { %509 = vmatmul.mubr.bf16.gmra.mxu0 %v104_v17  ;;  %517 = vmatmul.mubr.bf16.gmra.mxu1 %v108_v18 }
  0xe2   :  { %v506_v19 = vpop.f32.mrf.mxu0  ;;  %v514_v20 = vpop.f32.mrf.mxu1 }
  0xe3   :  { %v223_v21 = vadd.f32 %v506_v19, %v463_v9  ;;  %v696_v22 = vadd.f32 %v514_v20, %v463_v9 }
  0xe4   :  { %v214_v23 = vpop.f32.mrf.mxu0  ;;  %v246_v24 = vpop.f32.mrf.mxu1 }
  0xe5   :  { %279 = vst [vmem:[%s764_s5 + $0x10] sm:$0xff] %v223_v21  ;;  %v215_v25 = vadd.f32 %v463_v9, %v214_v23  ;;  %287 = vst [vmem:[%s764_s5 + $0x50] sm:$0xff] %v696_v22  ;;  %v247_v26 = vadd.f32 %v463_v9, %v246_v24  ;;  %v415_v44 = vmul.f32 %v223_v21, %v223_v21 }
  0xe6   :  { %v507_v27 = vpop.f32.mrf.mxu0  ;;  %v515_v28 = vpop.f32.mrf.mxu1  ;;  %v423_v15 = vmul.f32 %v696_v22, %v696_v22 }
  0xe7   :  { %277 = vst [vmem:[%s764_s5] sm:$0xff] %v215_v25  ;;  %v226_v29 = vadd.f32 %v507_v27, %v463_v9  ;;  %285 = vst [vmem:[%s764_s5 + $0x40] sm:$0xff] %v247_v26  ;;  %v711_v30 = vadd.f32 %v515_v28, %v463_v9  ;;  %v413_v37 = vmul.f32 %v215_v25, %v215_v25 }
  0xe8   :  { %v217_v31 = vpop.f32.mrf.mxu0  ;;  %v249_v32 = vpop.f32.mrf.mxu1  ;;  %v421_v10 = vmul.f32 %v247_v26, %v247_v26 }
  0xe9   :  { %280 = vst [vmem:[%s764_s5 + $0x18] sm:$0xff] %v226_v29  ;;  %v218_v33 = vadd.f32 %v463_v9, %v217_v31  ;;  %288 = vst [vmem:[%s764_s5 + $0x58] sm:$0xff] %v711_v30  ;;  %v250_v34 = vadd.f32 %v463_v9, %v249_v32  ;;  %v416_v51 = vmul.f32 %v226_v29, %v226_v29 }
  0xea   :  { %v510_v35 = vpop.f32.mrf.mxu0  ;;  %v518_v36 = vpop.f32.mrf.mxu1  ;;  %v424_v18 = vmul.f32 %v711_v30, %v711_v30 }
  0xeb   :  { %278 = vst [vmem:[%s764_s5 + $0x8] sm:$0xff] %v218_v33  ;;  %v392_v38 = vadd.f32 %v218_v33, %v215_v25  ;;  %v414_v39 = vmul.f32 %v218_v33, %v218_v33  ;;  %v239_v40 = vadd.f32 %v510_v35, %v463_v9  ;;  %286 = vst [vmem:[%s764_s5 + $0x48] sm:$0xff] %v250_v34 }
  0xec   :  { %v230_v41 = vpop.f32.mrf.mxu0  ;;  %v271_v42 = vadd.f32 %v518_v36, %v463_v9  ;;  %v262_v43 = vpop.f32.mrf.mxu1  ;;  %v422_v13 = vmul.f32 %v250_v34, %v250_v34 }
  0xed   :  { %v393_v45 = vadd.f32 %v392_v38, %v223_v21  ;;  %v429_v46 = vadd.f32 %v414_v39, %v413_v37  ;;  %283 = vst [vmem:[%s764_s5 + $0x30] sm:$0xff] %v239_v40  ;;  %v231_v47 = vadd.f32 %v463_v9, %v230_v41  ;;  %v263_v49 = vadd.f32 %v463_v9, %v262_v43 }
  0xee   :  { %v511_v48 = vpop.f32.mrf.mxu0  ;;  %291 = vst [vmem:[%s764_s5 + $0x70] sm:$0xff] %v271_v42  ;;  %v519_v50 = vpop.f32.mrf.mxu1  ;;  %v419_v2 = vmul.f32 %v239_v40, %v239_v40  ;;  %v427_v27 = vmul.f32 %v271_v42, %v271_v42 }
  0xef   :  { %v430_v52 = vadd.f32 %v429_v46, %v415_v44  ;;  %281 = vst [vmem:[%s764_s5 + $0x20] sm:$0xff] %v231_v47  ;;  %v394_v53 = vadd.f32 %v393_v45, %v226_v29  ;;  %v242_v54 = vadd.f32 %v511_v48, %v463_v9  ;;  %289 = vst [vmem:[%s764_s5 + $0x60] sm:$0xff] %v263_v49 }
  0xf0   :  { %v233_v55 = vpop.f32.mrf.mxu0  ;;  %v274_v56 = vadd.f32 %v519_v50, %v463_v9  ;;  %v265_v57 = vpop.f32.mrf.mxu1  ;;  %v417_v59 = vmul.f32 %v231_v47, %v231_v47  ;;  %v425_v21 = vmul.f32 %v263_v49, %v263_v49 }
  0xf1   :  { %v395_v58 = vadd.f32 %v394_v53, %v231_v47  ;;  %v431_v60 = vadd.f32 %v430_v52, %v416_v51  ;;  %284 = vst [vmem:[%s764_s5 + $0x38] sm:$0xff] %v242_v54  ;;  %v234_v61 = vadd.f32 %v463_v9, %v233_v55  ;;  %v266_v62 = vadd.f32 %v463_v9, %v265_v57 }
  0xf2   :  { %292 = vst [vmem:[%s764_s5 + $0x78] sm:$0xff] %v274_v56  ;;  %v420_v5 = vmul.f32 %v242_v54, %v242_v54  ;;  %v428_v31 = vmul.f32 %v274_v56, %v274_v56 }
  0xf3   :  { %v432_v63 = vadd.f32 %v431_v60, %v417_v59  ;;  %282 = vst [vmem:[%s764_s5 + $0x28] sm:$0xff] %v234_v61  ;;  %v396_v0 = vadd.f32 %v395_v58, %v234_v61  ;;  %v418_v1 = vmul.f32 %v234_v61, %v234_v61  ;;  %290 = vst [vmem:[%s764_s5 + $0x68] sm:$0xff] %v266_v62 }
  0xf5   :  { %v397_v3 = vadd.f32 %v396_v0, %v239_v40  ;;  %v433_v4 = vadd.f32 %v432_v63, %v418_v1 }
  0xf7   :  { %v434_v7 = vadd.f32 %v433_v4, %v419_v2  ;;  %v398_v8 = vadd.f32 %v397_v3, %v242_v54 }
  0xf9   :  { %v399_v11 = vadd.f32 %v398_v8, %v247_v26  ;;  %v435_v6 = vadd.f32 %v434_v7, %v420_v5  ;;  %v426_v26 = vmul.f32 %v266_v62, %v266_v62 }
  0xfb   :  { %v400_v12 = vadd.f32 %v399_v11, %v250_v34  ;;  %v436_v14 = vadd.f32 %v435_v6, %v421_v10 }
  0xfd   :  { %v401_v16 = vadd.f32 %v400_v12, %v696_v22  ;;  %v437_v17 = vadd.f32 %v436_v14, %v422_v13 }
  0xff   :  { %v438_v9 = vadd.f32 %v437_v17, %v423_v15  ;;  %v402_v19 = vadd.f32 %v401_v16, %v711_v30 }
 0x101   :  { %v403_v20 = vadd.f32 %v402_v19, %v263_v49  ;;  %v439_v23 = vadd.f32 %v438_v9, %v424_v18 }
 0x103   :  { %v440_v24 = vadd.f32 %v439_v23, %v425_v21  ;;  %v404_v25 = vadd.f32 %v403_v20, %v266_v62 }
 0x105   :  { %v405_v28 = vadd.f32 %v404_v25, %v271_v42  ;;  %v441_v29 = vadd.f32 %v440_v24, %v426_v26 }
 0x107   :  { %v406_v32 = vadd.f32 %v405_v28, %v274_v56  ;;  %v442_v33 = vadd.f32 %v441_v29, %v427_v27 }
 0x109   :  { %v407_v22 = vrot.slane %v406_v32, 4  ;;  %v443_v34 = vadd.f32 %v442_v33, %v428_v31 }
 0x10b   :  { %v408_v35 = vadd.f32 %v407_v22, %v406_v32  ;;  %v444_v36 = vrot.slane %v443_v34, 4 }
 0x10d   :  { %v409_v37 = vrot.slane %v408_v35, 2  ;;  %v445_v38 = vadd.f32 %v444_v36, %v443_v34 }
 0x10f   :  { %v410_v39 = vadd.f32 %v409_v37, %v408_v35  ;;  %v446_v30 = vrot.slane %v445_v38, 2 }
 0x111   :  { %v411_v40 = vrot.slane %v410_v39, 1  ;;  %v447_v41 = vadd.f32 %v446_v30, %v445_v38 }
 0x113   :  { %v448_v43 = vrot.slane %v447_v41, 1  ;;  %v412_v44 = vadd.f32 %v411_v40, %v410_v39 }
 0x115   :  { %v449_v45 = vadd.f32 %v448_v43, %v447_v41 }
 0x117   :  { %v451_v46 = vsel %vm450_vm0, %v412_v44, %v449_v45 }
 0x118   :  { %452 = vst [vmem:[%s765_s6] sm:$0x3] %v451_v46 }

// kernel: bottleneck_block_forward.7
= control target key start
LH: loop header
LB: loop body
LE: loop exit
PB: predicated region body
PF: predicated region fallthrough
CT: control target
= control target key end

     0   :  { %s675_s0 = inlined_call_operand.vmem [shape: f32[128,128], index: 0, kind: input, shape index: {}]   ;;  %s676_s1 = inlined_call_operand.vmem [shape: f32[128,128], index: 1, kind: input, shape index: {}]   ;;  %s677_s2 = inlined_call_operand.vmem [shape: f32[1,128], index: 2, kind: input, shape index: {}]   ;;  %s678_s3 = inlined_call_operand.vmem [shape: f32[1,128], index: 3, kind: input, shape index: {}]   ;;  %s679_s4 = inlined_call_operand.vmem [shape: bf16[128,128], index: 4, kind: input, shape index: {}]   ;;  %s680_s5 = inlined_call_operand.vmem [shape: f32[1,128], index: 5, kind: input, shape index: {}]   ;;  %s681_s6 = inlined_call_operand.hbm [shape: f32[128,128], index: 6, kind: output, shape index: {}]  }
   0x1   :  { %v421_v0 = vld [vmem:[%s679_s4 + $0x38] sm:$0xff]   ;;  %v422_v1 = vld [vmem:[%s679_s4 + $0x30] sm:$0xff]   ;;  %v423_v2 = vld [vmem:[%s679_s4 + $0x28] sm:$0xff]  }
   0x2   :  { %370 = vmatprep.subr.bf16.mxu0 %v421_v0  ;;  %402 = vmatprep.subr.bf16.mxu1 %v421_v0  ;;  %v424_v3 = vld [vmem:[%s679_s4 + $0x20] sm:$0xff]   ;;  %v26_v5 = vld [vmem:[%s675_s0 + $0x8] sm:$0xff]  ;;  %v425_v16 = vld [vmem:[%s679_s4 + $0x18] sm:$0xff]  }
   0x3   :  { %371 = vmatpush3.bf16.msra.mxu0 %v421_v0  ;;  %410 = vmatpush3.bf16.msra.mxu1 %v421_v0  ;;  %v25_v4 = vld [vmem:[%s675_s0] sm:$0xff]  ;;  %v34_v11 = vld [vmem:[%s675_s0 + $0x48] sm:$0xff]  ;;  %v27_v21 = vld [vmem:[%s675_s0 + $0x10] sm:$0xff] }
   0x4   :  { %372 = vmatprep.subr.bf16.mxu0 %v422_v1  ;;  %403 = vmatprep.subr.bf16.mxu1 %v422_v1  ;;  %v510_v6 = vld [vmem:[%s677_s2] ss:$0 sm:$0xff]  ;;  %v28_v22 = vld [vmem:[%s675_s0 + $0x18] sm:$0xff]  ;;  %v35_v25 = vld [vmem:[%s675_s0 + $0x50] sm:$0xff] }
   0x5   :  { %v48_v7 = vmul.f32 %v510_v6, %v25_v4  ;;  %v49_v8 = vmul.f32 %v510_v6, %v26_v5  ;;  %v517_v9 = vld [vmem:[%s678_s3] ss:$0 sm:$0xff]  ;;  %v57_v13 = vmul.f32 %v510_v6, %v34_v11  ;;  %v36_v26 = vld [vmem:[%s675_s0 + $0x58] sm:$0xff] }
   0x6   :  { %v33_v10 = vld [vmem:[%s675_s0 + $0x40] sm:$0xff] }
   0x7   :  { %373 = vmatpush3.bf16.msra.mxu0 %v422_v1  ;;  %411 = vmatpush3.bf16.msra.mxu1 %v422_v1  ;;  %v56_v12 = vmul.f32 %v510_v6, %v33_v10  ;;  %v71_v14 = vadd.f32 %v517_v9, %v48_v7  ;;  %v72_v15 = vadd.f32 %v517_v9, %v49_v8 }
   0x8   :  { %374 = vmatprep.subr.bf16.mxu0 %v423_v2  ;;  %404 = vmatprep.subr.bf16.mxu1 %v423_v2  ;;  %v80_v18 = vadd.f32 %v517_v9, %v57_v13 }
   0x9   :  { %v79_v17 = vadd.f32 %v517_v9, %v56_v12  ;;  %v87_v19 = vmax.f32 %v71_v14, 0.0  ;;  %v88_v20 = vmax.f32 %v72_v15, 0.0 }
   0xa   :  { %v96_v24 = vmax.f32 %v80_v18, 0.0 }
   0xb   :  { %375 = vmatpush3.bf16.msra.mxu0 %v423_v2  ;;  %412 = vmatpush3.bf16.msra.mxu1 %v423_v2  ;;  %v95_v23 = vmax.f32 %v79_v17, 0.0 }
   0xc   :  { %376 = vmatprep.subr.bf16.mxu0 %v424_v3  ;;  %405 = vmatprep.subr.bf16.mxu1 %v424_v3 }
   0xd   :  { %11 = vsyncpa [#allocation3], 0  ;;  %v426_v27 = vld [vmem:[%s679_s4 + $0x10] sm:$0xff]   ;;  %v103_v28 = vpack.c.bf16 %v88_v20, %v87_v19  ;;  %v29_v29 = vld [vmem:[%s675_s0 + $0x20] sm:$0xff]  ;;  %v107_v30 = vpack.c.bf16 %v96_v24, %v95_v23  ;;  %v50_v34 = vmul.f32 %v510_v6, %v27_v21  ;;  %v51_v35 = vmul.f32 %v510_v6, %v28_v22 }
   0xe   :  { %v30_v31 = vld [vmem:[%s675_s0 + $0x28] sm:$0xff]  ;;  %v37_v32 = vld [vmem:[%s675_s0 + $0x60] sm:$0xff]  ;;  %v58_v36 = vmul.f32 %v510_v6, %v35_v25  ;;  %v59_v37 = vmul.f32 %v510_v6, %v36_v26  ;;  %v52_v38 = vmul.f32 %v510_v6, %v29_v29  ;;  %v31_v48 = vld [vmem:[%s675_s0 + $0x30] sm:$0xff] }
   0xf   :  { %377 = vmatpush3.bf16.msra.mxu0 %v424_v3  ;;  %413 = vmatpush3.bf16.msra.mxu1 %v424_v3  ;;  %v38_v33 = vld [vmem:[%s675_s0 + $0x68] sm:$0xff]  ;;  %v53_v39 = vmul.f32 %v510_v6, %v30_v31  ;;  %v60_v40 = vmul.f32 %v510_v6, %v37_v32  ;;  %v73_v43 = vadd.f32 %v517_v9, %v50_v34  ;;  %v32_v52 = vld [vmem:[%s675_s0 + $0x38] sm:$0xff]  ;;  %v39_v53 = vld [vmem:[%s675_s0 + $0x70] sm:$0xff] }
  0x10   :  { %378 = vmatprep.subr.bf16.mxu0 %v425_v16  ;;  %406 = vmatprep.subr.bf16.mxu1 %v425_v16  ;;  %v61_v41 = vmul.f32 %v510_v6, %v38_v33  ;;  %v427_v42 = vld [vmem:[%s679_s4 + $0x8] sm:$0xff]   ;;  %v74_v44 = vadd.f32 %v517_v9, %v51_v35  ;;  %v81_v45 = vadd.f32 %v517_v9, %v58_v36  ;;  %v40_v54 = vld [vmem:[%s675_s0 + $0x78] sm:$0xff]  ;;  %v428_v55 = vld [vmem:[%s679_s4] sm:$0xff]   ;;  %s451_s4 = smov [#allocation2]  }
  0x11   :  { %386 = vmatprep.mubr.bf16.mxu0 %v103_v28  ;;  %394 = vmatprep.mubr.bf16.mxu1 %v107_v30  ;;  %v82_v46 = vadd.f32 %v517_v9, %v59_v37  ;;  %v75_v47 = vadd.f32 %v517_v9, %v52_v38  ;;  %v76_v49 = vadd.f32 %v517_v9, %v53_v39  ;;  %v89_v56 = vmax.f32 %v73_v43, 0.0  ;;  %v281_v20 = vld [vmem:[%s676_s1 + $0x10] sm:$0xff]  ;;  %v279_v26 = vld [vmem:[%s676_s1] sm:$0xff]  ;;  %v282_v34 = vld [vmem:[%s676_s1 + $0x18] sm:$0xff]  ;;  %s332_s21 = sshll.u32 %s451_s4, 4  ;;  %s333_s21 = int_to_ptr.vmem [resolvable:$true] %s332_s21 }
  0x12   :  { %v83_v50 = vadd.f32 %v517_v9, %v60_v40  ;;  %v84_v51 = vadd.f32 %v517_v9, %v61_v41  ;;  %v90_v57 = vmax.f32 %v74_v44, 0.0  ;;  %v97_v58 = vmax.f32 %v81_v45, 0.0  ;;  %v289_v22 = vld [vmem:[%s676_s1 + $0x50] sm:$0xff]  ;;  %v287_v28 = vld [vmem:[%s676_s1 + $0x40] sm:$0xff]  ;;  %v290_v36 = vld [vmem:[%s676_s1 + $0x58] sm:$0xff]  ;;  %s429_s26 = scalar_lea.vmem %s333_s21, 2048  ;;  %p434_p1 = scmp.lt.s32.totalorder %s333_s21, %s333_s21 }
  0x13   :  { %379 = vmatpush3.bf16.msra.mxu0 %v425_v16  ;;  %414 = vmatpush3.bf16.msra.mxu1 %v425_v16  ;;  %v98_v59 = vmax.f32 %v82_v46, 0.0  ;;  %v54_v60 = vmul.f32 %v510_v6, %v31_v48  ;;  %v55_v61 = vmul.f32 %v510_v6, %v32_v52  ;;  %v62_v62 = vmul.f32 %v510_v6, %v39_v53  ;;  %v288_v44 = vld [vmem:[%s676_s1 + $0x48] sm:$0xff]  ;;  %v293_v52 = vld [vmem:[%s676_s1 + $0x70] sm:$0xff]  ;;  %p430_p0 = scmp.ne.s32.totalorder %s333_s21, %s429_s26  ;;  %p435_p2 = scmp.lt.s32.totalorder %s429_s26, %s429_s26 }
  0x14   :  { %380 = vmatprep.subr.bf16.mxu0 %v426_v27  ;;  %407 = vmatprep.subr.bf16.mxu1 %v426_v27  ;;  %v63_v63 = vmul.f32 %v510_v6, %v40_v54  ;;  %v91_v0 = vmax.f32 %v75_v47, 0.0  ;;  %v92_v1 = vmax.f32 %v76_v49, 0.0  ;;  %v99_v2 = vmax.f32 %v83_v50, 0.0  ;;  %v285_v50 = vld [vmem:[%s676_s1 + $0x30] sm:$0xff] }
  0x15   :  { %v100_v3 = vmax.f32 %v84_v51, 0.0  ;;  %v104_v4 = vpack.c.bf16 %v90_v57, %v89_v56  ;;  %v108_v5 = vpack.c.bf16 %v98_v59, %v97_v58  ;;  %v77_v7 = vadd.f32 %v517_v9, %v54_v60  ;;  %v283_v58 = vld [vmem:[%s676_s1 + $0x20] sm:$0xff]  ;;  %p436_p3 = por %p435_p2, %p434_p1 }
  0x16   :  { %v78_v8 = vadd.f32 %v517_v9, %v55_v61  ;;  %v85_v10 = vadd.f32 %v517_v9, %v62_v62  ;;  %v86_v11 = vadd.f32 %v517_v9, %v63_v63  ;;  %v105_v6 = vpack.c.bf16 %v92_v1, %v91_v0  ;;  %v606_v9 = vld [vmem:[%s680_s5] ss:$0 sm:$0xff] }
  0x17   :  { %381 = vmatpush3.bf16.msra.mxu0 %v426_v27  ;;  %415 = vmatpush3.bf16.msra.mxu1 %v426_v27  ;;  %v109_v12 = vpack.c.bf16 %v100_v3, %v99_v2  ;;  %v93_v13 = vmax.f32 %v77_v7, 0.0  ;;  %v291_v60 = vld [vmem:[%s676_s1 + $0x60] sm:$0xff]  ;;  %v286_v2 = vld [vmem:[%s676_s1 + $0x38] sm:$0xff]  ;;  %p437_p4 = pnand %p436_p3, %p430_p0 }
  0x18   :  { %382 = vmatprep.subr.bf16.mxu0 %v427_v42  ;;  %408 = vmatprep.subr.bf16.mxu1 %v427_v42  ;;  %v94_v14 = vmax.f32 %v78_v8, 0.0  ;;  %v101_v15 = vmax.f32 %v85_v10, 0.0  ;;  %v102_v16 = vmax.f32 %v86_v11, 0.0 }
  0x1a   :  { %v106_v17 = vpack.c.bf16 %v94_v14, %v93_v13  ;;  %v110_v18 = vpack.c.bf16 %v102_v16, %v101_v15  ;;  %v292_v13 = vld [vmem:[%s676_s1 + $0x68] sm:$0xff] }
  0x1b   :  { %383 = vmatpush3.bf16.msra.mxu0 %v427_v42  ;;  %416 = vmatpush3.bf16.msra.mxu1 %v427_v42  ;;  %v280_v42 = vld [vmem:[%s676_s1 + $0x8] sm:$0xff] }
  0x1c   :  { %384 = vmatprep.subr.bf16.mxu0 %v428_v55  ;;  %409 = vmatprep.subr.bf16.mxu1 %v428_v55 }
  0x1f   :  { %385 = vmatpush3.bf16.msra.mxu0 %v428_v55  ;;  %417 = vmatpush3.bf16.msra.mxu1 %v428_v55 }
  0x22   :  { %387 = vmatmul.mubr.bf16.vlgmr.msra.gmra.mxu0 %v104_v4  ;;  %395 = vmatmul.mubr.bf16.vlgmr.msra.gmra.mxu1 %v108_v5  ;;  %v294_v4 = vld [vmem:[%s676_s1 + $0x78] sm:$0xff] }
  0x23   :  { %390 = vmatprep.mubr.bf16.mxu0 %v105_v6  ;;  %398 = vmatprep.mubr.bf16.mxu1 %v109_v12  ;;  %v284_v6 = vld [vmem:[%s676_s1 + $0x28] sm:$0xff] }
  0x2a   :  { %391 = vmatmul.mubr.bf16.gmra.mxu0 %v106_v17  ;;  %399 = vmatmul.mubr.bf16.gmra.mxu1 %v110_v18 }
  0xe2   :  { %v388_v19 = vpop.f32.mrf.mxu0  ;;  %v396_v21 = vpop.f32.mrf.mxu1 }
  0xe3   :  { %v225_v23 = vadd.f32 %v388_v19, %v606_v9  ;;  %v257_v24 = vadd.f32 %v396_v21, %v606_v9 }
  0xe4   :  { %v216_v25 = vpop.f32.mrf.mxu0  ;;  %v248_v27 = vpop.f32.mrf.mxu1 }
  0xe5   :  { %v297_v29 = vadd.f32 %v281_v20, %v225_v23  ;;  %v305_v30 = vadd.f32 %v289_v22, %v257_v24  ;;  %v217_v31 = vadd.f32 %v606_v9, %v216_v25  ;;  %v249_v32 = vadd.f32 %v606_v9, %v248_v27 }
  0xe6   :  { %v389_v33 = vpop.f32.mrf.mxu0  ;;  %v397_v35 = vpop.f32.mrf.mxu1 }
  0xe7   :  { %313 = vst [vmem:[#allocation2 + $0x10] sm:$0xff] %v297_v29  ;;  %321 = vst [vmem:[#allocation2 + $0x50] sm:$0xff] %v305_v30  ;;  %v295_v37 = vadd.f32 %v279_v26, %v217_v31  ;;  %v303_v38 = vadd.f32 %v287_v28, %v249_v32  ;;  %v228_v39 = vadd.f32 %v389_v33, %v606_v9 }
  0xe8   :  { %v260_v40 = vadd.f32 %v397_v35, %v606_v9  ;;  %v219_v41 = vpop.f32.mrf.mxu0  ;;  %v251_v43 = vpop.f32.mrf.mxu1 }
  0xe9   :  { %311 = vst [vmem:[#allocation2] sm:$0xff] %v295_v37  ;;  %319 = vst [vmem:[#allocation2 + $0x40] sm:$0xff] %v303_v38  ;;  %v298_v45 = vadd.f32 %v282_v34, %v228_v39  ;;  %v220_v47 = vadd.f32 %v606_v9, %v219_v41  ;;  %v252_v48 = vadd.f32 %v606_v9, %v251_v43 }
  0xea   :  { %v306_v46 = vadd.f32 %v290_v36, %v260_v40  ;;  %v392_v49 = vpop.f32.mrf.mxu0  ;;  %v400_v51 = vpop.f32.mrf.mxu1 }
  0xeb   :  { %314 = vst [vmem:[#allocation2 + $0x18] sm:$0xff] %v298_v45  ;;  %v296_v53 = vadd.f32 %v280_v42, %v220_v47  ;;  %v304_v54 = vadd.f32 %v288_v44, %v252_v48  ;;  %v241_v55 = vadd.f32 %v392_v49, %v606_v9  ;;  %v273_v56 = vadd.f32 %v400_v51, %v606_v9 }
  0xec   :  { %322 = vst [vmem:[#allocation2 + $0x58] sm:$0xff] %v306_v46  ;;  %v232_v57 = vpop.f32.mrf.mxu0  ;;  %v264_v59 = vpop.f32.mrf.mxu1 }
  0xed   :  { %312 = vst [vmem:[#allocation2 + $0x8] sm:$0xff] %v296_v53  ;;  %320 = vst [vmem:[#allocation2 + $0x48] sm:$0xff] %v304_v54  ;;  %v301_v61 = vadd.f32 %v285_v50, %v241_v55  ;;  %v309_v62 = vadd.f32 %v293_v52, %v273_v56  ;;  %v233_v63 = vadd.f32 %v606_v9, %v232_v57 }
  0xee   :  { %v265_v0 = vadd.f32 %v606_v9, %v264_v59  ;;  %v393_v1 = vpop.f32.mrf.mxu0  ;;  %v401_v3 = vpop.f32.mrf.mxu1 }
  0xef   :  { %317 = vst [vmem:[#allocation2 + $0x30] sm:$0xff] %v301_v61  ;;  %325 = vst [vmem:[#allocation2 + $0x70] sm:$0xff] %v309_v62  ;;  %v299_v5 = vadd.f32 %v283_v58, %v233_v63  ;;  %v244_v8 = vadd.f32 %v393_v1, %v606_v9  ;;  %v276_v10 = vadd.f32 %v401_v3, %v606_v9 }
  0xf0   :  { %v307_v7 = vadd.f32 %v291_v60, %v265_v0  ;;  %v235_v11 = vpop.f32.mrf.mxu0  ;;  %v267_v12 = vpop.f32.mrf.mxu1 }
  0xf1   :  { %315 = vst [vmem:[#allocation2 + $0x20] sm:$0xff] %v299_v5  ;;  %v302_v14 = vadd.f32 %v286_v2, %v244_v8  ;;  %v310_v15 = vadd.f32 %v294_v4, %v276_v10  ;;  %v236_v16 = vadd.f32 %v606_v9, %v235_v11  ;;  %v268_v17 = vadd.f32 %v606_v9, %v267_v12 }
  0xf2   :  { %323 = vst [vmem:[#allocation2 + $0x60] sm:$0xff] %v307_v7 }
  0xf3   :  { %318 = vst [vmem:[#allocation2 + $0x38] sm:$0xff] %v302_v14  ;;  %326 = vst [vmem:[#allocation2 + $0x78] sm:$0xff] %v310_v15  ;;  %v300_v18 = vadd.f32 %v284_v6, %v236_v16  ;;  %v308_v19 = vadd.f32 %v292_v13, %v268_v17 }
  0xf5   :  { %316 = vst [vmem:[#allocation2 + $0x28] sm:$0xff] %v300_v18  ;;  %324 = vst [vmem:[#allocation2 + $0x68] sm:$0xff] %v308_v19 }
  0xf6   :  { %440 = shalt.err (!%p437_p4)
}
  0xf7   :  { %s452_s1 = smov 128   ;;  %s453_s5 = smov 8  }
  0xf8   :  { %338 = dma.vmem_to_hbm [thread:$0]  %s333_s21, 2048, %s681_s6, [#allocation3], %s452_s1, %s452_s1, %s453_s5  }
  0xf9   :  { %449 = dma.done.wait [#allocation3], 2048  }
  0xfa   :  { %450 = vsyncadd [#allocation3], 4294965248 }
  0xfb   :  { %342 = vsyncpa [#allocation3], 1 }

// kernel: bottleneck_block_forward.6
= control target key start
LH: loop header
LB: loop body
LE: loop exit
PB: predicated region body
PF: predicated region fallthrough
CT: control target
= control target key end

     0   :  { %s2115_s21 = smov 0   ;;  %s2685_s0 = inlined_call_operand.vmem [shape: f32[2,10,10,128], index: 0, kind: input, shape index: {}]   ;;  %s2686_s1 = inlined_call_operand.vmem [shape: f32[1,128], index: 1, kind: input, shape index: {}]   ;;  %s2687_s2 = inlined_call_operand.vmem [shape: f32[1,128], index: 2, kind: input, shape index: {}]   ;;  %s2688_s3 = inlined_call_operand.vmem [shape: bf16[1152,128], index: 3, kind: input, shape index: {}]   ;;  %s2689_s4 = inlined_call_operand.vmem [shape: f32[1,128], index: 4, kind: input, shape index: {}]   ;;  %s2690_s5 = inlined_call_operand.vmem [shape: f32[2,64,128], index: 5, kind: output, shape index: {0}]   ;;  %s2691_s6 = inlined_call_operand.vmem [shape: f32[2,2,128], index: 6, kind: output, shape index: {1}]  }
   0x1 LB: > { %s1624_s22 = sadd.s32 4294967295, %s2076_s21   ;;  %p1628_p0 = scmp.ge.s32.totalorder %s2076_s21, 1  ;;  %s2076_s21 = sphi %s2115_s21, %s17_s21  }
   0x2   : > { %p215_p1 = scmp.lt.s32.totalorder %s2076_s21, 3 }
   0x4   : > { %p216_p2 = pnand %p1628_p0, %p215_p1 }
   0x6   : > { %219 = sbr.rel (%p216_p2) target bundleno = 347 (0x15b), region = 40 }
   0xb   : > { %v1998_v0 = vld [vmem:[%s2688_s3 + $0x78] sm:$0xff]   ;;  %v2002_v4 = vld [vmem:[%s2688_s3 + $0x70] sm:$0xff]   ;;  %v2006_v8 = vld [vmem:[%s2688_s3 + $0x68] sm:$0xff]   ;;  %p249_p3 = scmp.lt.s32.totalorder %s1624_s22, 1  ;;  %v358_v25 = vlaneseq  ;;  %v2078_v62 = vmov 0.0|0.0   ;;  %vm1535_vm3 = vcmask 1040384  }
   0xc   : > { %v1999_v1 = vld [vmem:[%s2688_s3 + $0xf8] sm:$0xff]   ;;  %1775 = vmatprep.subr.bf16.mxu0 %v1998_v0  ;;  %v2003_v5 = vld [vmem:[%s2688_s3 + $0xf0] sm:$0xff]   ;;  %v2007_v9 = vld [vmem:[%s2688_s3 + $0xe8] sm:$0xff]   ;;  %v2288_v63 = vrot.slane %v2078_v62, 1 }
   0xd   : > { %v2000_v2 = vld [vmem:[%s2688_s3 + $0x38] sm:$0xff]   ;;  %1815 = vmatprep.subr.bf16.mxu1 %v1999_v1  ;;  %v2004_v6 = vld [vmem:[%s2688_s3 + $0x30] sm:$0xff]   ;;  %v2008_v10 = vld [vmem:[%s2688_s3 + $0x28] sm:$0xff]   ;;  %s2703_s22 = smov (!%p249_p3, %s1624_s22), 1  ;;  %v2217_v30 = vshrl.u32 %v358_v25, 7 }
   0xe   : > { %v2001_v3 = vld [vmem:[%s2688_s3 + $0xb8] sm:$0xff]   ;;  %1776 = vmatpush3.bf16.msra.mxu0 %v2000_v2  ;;  %v2005_v7 = vld [vmem:[%s2688_s3 + $0xb0] sm:$0xff]   ;;  %v2009_v11 = vld [vmem:[%s2688_s3 + $0xa8] sm:$0xff]   ;;  %s1987_s7 = smul.u32 160, %s2703_s22  ;;  %s1737_s25 = sshll.u32 %s2703_s22, 6 }
   0xf   : > { %1816 = vmatpush3.bf16.msra.mxu1 %v2001_v3  ;;  %1777 = vmatprep.subr.bf16.mxu0 %v2002_v4  ;;  %v2010_v12 = vld [vmem:[%s2688_s3 + $0x60] sm:$0xff]   ;;  %v2014_v16 = vld [vmem:[%s2688_s3 + $0x58] sm:$0xff]   ;;  %v2018_v20 = vld [vmem:[%s2688_s3 + $0x50] sm:$0xff]   ;;  %v2237_v37 = vadd.s32 8, %v2217_v30  ;;  %vm361_vm0 = vcmp.ge.s32.totalorder %v2217_v30, 1  ;;  %v2079_v4 = vmov 0   ;;  %s2666_s28 = scalar_lea.vmem %s2690_s5, %s1737_s25 }
  0x10   : > { %1817 = vmatprep.subr.bf16.mxu1 %v2003_v5  ;;  %v2011_v13 = vld [vmem:[%s2688_s3 + $0xe0] sm:$0xff]   ;;  %v2015_v17 = vld [vmem:[%s2688_s3 + $0xd8] sm:$0xff]   ;;  %v2019_v21 = vld [vmem:[%s2688_s3 + $0xd0] sm:$0xff]   ;;  %s2225_s18 = scalar_lea.vmem %s2685_s0, %s1987_s7  ;;  %v2297_v5 = vrot.slane %v2079_v4, 1  ;;  %s1632_s29 = sshll.u32 %s2703_s22, 1 }
  0x11   : > { %v2012_v14 = vld [vmem:[%s2688_s3 + $0x20] sm:$0xff]   ;;  %v2016_v18 = vld [vmem:[%s2688_s3 + $0x18] sm:$0xff]   ;;  %v2020_v22 = vld [vmem:[%s2688_s3 + $0x10] sm:$0xff]   ;;  %vm368_vm1 = vcmp.le.s32.totalorder %v2237_v37, 8  ;;  %s262_s8 = scalar_lea.vmem %s2691_s6, %s1632_s29 }
  0x12   : > { %1778 = vmatpush3.bf16.msra.mxu0 %v2004_v6  ;;  %v2013_v15 = vld [vmem:[%s2688_s3 + $0xa0] sm:$0xff]   ;;  %v2017_v19 = vld [vmem:[%s2688_s3 + $0x98] sm:$0xff]   ;;  %v2021_v23 = vld [vmem:[%s2688_s3 + $0x90] sm:$0xff]  }
  0x13   : > { %1818 = vmatpush3.bf16.msra.mxu1 %v2005_v7  ;;  %1779 = vmatprep.subr.bf16.mxu0 %v2006_v8  ;;  %v2022_v24 = vld [vmem:[%s2688_s3 + $0x48] sm:$0xff]   ;;  %v2026_v29 = vld [vmem:[%s2688_s3 + $0x40] sm:$0xff]   ;;  %v266_v34 = vld [vmem:[%s2225_s18 + $0x10] sm:$0xff] }
  0x14   : > { %1819 = vmatprep.subr.bf16.mxu1 %v2007_v9  ;;  %v2023_v26 = vld [vmem:[%s2688_s3 + $0xc8] sm:$0xff]   ;;  %v2027_v31 = vld [vmem:[%s2688_s3 + $0xc0] sm:$0xff]   ;;  %v267_v35 = vld [vmem:[%s2225_s18 + $0x18] sm:$0x3] }
  0x15   : > { %v2024_v27 = vld [vmem:[%s2688_s3 + $0x8] sm:$0xff]   ;;  %v2028_v32 = vld [vmem:[%s2688_s3] sm:$0xff]   ;;  %v2030_v45 = vld [vmem:[%s2688_s3 + $0x178] sm:$0xff]  }
  0x16   : > { %1780 = vmatpush3.bf16.msra.mxu0 %v2008_v10  ;;  %v2025_v28 = vld [vmem:[%s2688_s3 + $0x88] sm:$0xff]   ;;  %v2029_v33 = vld [vmem:[%s2688_s3 + $0x80] sm:$0xff]   ;;  %v2031_v50 = vld [vmem:[%s2688_s3 + $0x1f8] sm:$0xff]  }
  0x17   : > { %1820 = vmatpush3.bf16.msra.mxu1 %v2009_v11  ;;  %1781 = vmatprep.subr.bf16.mxu0 %v2010_v12  ;;  %v268_v36 = vld [vmem:[%s2225_s18 + $0x20] sm:$0xff]  ;;  %v269_v38 = vld [vmem:[%s2225_s18 + $0x28] sm:$0x3]  ;;  %vm2280_vm2 = vmpackc.low %vm361_vm0, %vm361_vm0 }
  0x18   : > { %1821 = vmatprep.subr.bf16.mxu1 %v2011_v13  ;;  %v2243_v39 = vld [vmem:[%s2686_s1] ss:$0 sm:$0xff]  ;;  %v270_v3 = vld [vmem:[%s2225_s18 + $0x30] sm:$0xff]  ;;  %v271_v7 = vld [vmem:[%s2225_s18 + $0x38] sm:$0x3] }
  0x19   : > { %v2248_v40 = vld [vmem:[%s2687_s2] ss:$0 sm:$0xff]  ;;  %v293_v41 = vmul.f32 %v2243_v39, %v266_v34  ;;  %v294_v42 = vmul.f32 %v2243_v39, %v267_v35  ;;  %v295_v43 = vmul.f32 %v2243_v39, %v268_v36  ;;  %v296_v44 = vmul.f32 %v2243_v39, %v269_v38  ;;  %v2033_v11 = vld [vmem:[%s2688_s3 + $0x1b8] sm:$0xff]   ;;  %v2037_v25 = vld [vmem:[%s2688_s3 + $0x1b0] sm:$0xff]  }
  0x1a   : > { %1782 = vmatpush3.bf16.msra.mxu0 %v2012_v14  ;;  %v297_v8 = vmul.f32 %v2243_v39, %v270_v3  ;;  %v272_v9 = vld [vmem:[%s2225_s18 + $0x40] sm:$0xff]  ;;  %v298_v12 = vmul.f32 %v2243_v39, %v271_v7  ;;  %v2039_v36 = vld [vmem:[%s2688_s3 + $0x1e8] sm:$0xff]   ;;  %v2063_v30 = vld [vmem:[%s2688_s3 + $0x230] sm:$0xff]  }
  0x1b   : > { %1822 = vmatpush3.bf16.msra.mxu1 %v2013_v15  ;;  %1783 = vmatprep.subr.bf16.mxu0 %v2014_v16  ;;  %v320_v46 = vadd.f32 %v2248_v40, %v293_v41  ;;  %v321_v47 = vadd.f32 %v2248_v40, %v294_v42  ;;  %v322_v48 = vadd.f32 %v2248_v40, %v295_v43  ;;  %v2035_v16 = vld [vmem:[%s2688_s3 + $0x1f0] sm:$0xff]   ;;  %v2038_v42 = vld [vmem:[%s2688_s3 + $0x168] sm:$0xff]   ;;  %v2045_v4 = vld [vmem:[%s2688_s3 + $0x1a0] sm:$0xff]  }
  0x1c   : > { %1823 = vmatprep.subr.bf16.mxu1 %v2015_v17  ;;  %v323_v49 = vadd.f32 %v2248_v40, %v296_v44  ;;  %v299_v13 = vmul.f32 %v2243_v39, %v272_v9  ;;  %v324_v17 = vadd.f32 %v2248_v40, %v297_v8  ;;  %v2041_v43 = vld [vmem:[%s2688_s3 + $0x1a8] sm:$0xff]   ;;  %v2069_v59 = vld [vmem:[%s2688_s3 + $0x200] sm:$0xff]  }
  0x1d   : > { %v340_v51 = vmax.f32 %v320_v46, 0.0  ;;  %v341_v52 = vmax.f32 %v321_v47, 0.0  ;;  %v2266_v53 = vmax.f32 %v322_v48, 0.0  ;;  %v273_v44 = vld [vmem:[%s2225_s18 + $0x48] sm:$0x3] }
  0x1e   : > { %1784 = vmatpush3.bf16.msra.mxu0 %v2016_v18  ;;  %v343_v54 = vmax.f32 %v323_v49, 0.0  ;;  %v275_v49 = vld [vmem:[%s2225_s18 + $0x58] sm:$0x3] }
  0x1f   : > { %1824 = vmatpush3.bf16.msra.mxu1 %v2017_v19  ;;  %1785 = vmatprep.subr.bf16.mxu0 %v2018_v20  ;;  %v383_v55 = vsel %vm361_vm0, %v340_v51, 0.0  ;;  %v384_v56 = vsel %vm368_vm1, %v341_v52, 0.0  ;;  %v385_v57 = vsel %vm361_vm0, %v2266_v53, 0.0  ;;  %v1755_v61 = vpack.c.bf16 %v2266_v53, %v340_v51  ;;  %v2032_v20 = vld [vmem:[%s2688_s3 + $0x138] sm:$0xff]   ;;  %v276_v51 = vld [vmem:[%s2225_s18 + $0x60] sm:$0xff]  ;;  %v2040_v52 = vld [vmem:[%s2688_s3 + $0x128] sm:$0xff]  }
  0x20   : > { %1825 = vmatprep.subr.bf16.mxu1 %v2019_v21  ;;  %v386_v58 = vsel %vm368_vm1, %v343_v54, 0.0  ;;  %v2284_v60 = vpack.c.bf16 %v384_v56, %v383_v55  ;;  %v325_v21 = vadd.f32 %v2248_v40, %v298_v12  ;;  %v2043_v54 = vld [vmem:[%s2688_s3 + $0x1e0] sm:$0xff]   ;;  %v302_v56 = vmul.f32 %v2243_v39, %v275_v49 }
  0x21   : > { %v2290_v0 = vpack.c.bf16 %v386_v58, %v385_v57  ;;  %1756 = vmatprep.mubr.msk.bf16.mxu1 %vm2280_vm2, %v1755_v61  ;;  %v303_v57 = vmul.f32 %v2243_v39, %v276_v51  ;;  %v280_v51 = vld [vmem:[%s2225_s18 + $0x80] sm:$0xff] }
  0x22   : > { %1786 = vmatpush3.bf16.msra.mxu0 %v2020_v22  ;;  %v419_v1 = vshrl.u32 %v2284_v60, 16  ;;  %v421_v2 = vshll.u32 %v2284_v60, 16  ;;  %v476_v6 = vrot.slane %v2284_v60, 1  ;;  %v326_v22 = vadd.f32 %v2248_v40, %v299_v13 }
  0x23   : > { %1826 = vmatpush3.bf16.msra.mxu1 %v2021_v23  ;;  %1787 = vmatprep.subr.bf16.mxu0 %v2022_v24  ;;  %v426_v14 = vshrl.u32 %v2290_v0, 16  ;;  %v428_v19 = vshll.u32 %v2290_v0, 16  ;;  %v1636_v23 = vcombine.low %v2078_v62, %v2284_v60  ;;  %v2034_v24 = vld [vmem:[%s2688_s3 + $0x170] sm:$0xff]   ;;  %v329_v8 = vadd.f32 %v2248_v40, %v302_v56 }
  0x24   : > { %1827 = vmatprep.subr.bf16.mxu1 %v2023_v26  ;;  %v423_v10 = vrot.slane %v421_v2, 1  ;;  %v1638_v15 = vcombine.low %v2288_v63, %v476_v6  ;;  %v344_v26 = vmax.f32 %v324_v17, 0.0  ;;  %v2042_v2 = vld [vmem:[%s2688_s3 + $0x160] sm:$0xff]   ;;  %v330_v9 = vadd.f32 %v2248_v40, %v303_v57  ;;  %v2050_v56 = vld [vmem:[%s2688_s3 + $0x150] sm:$0xff]  }
  0x25   : > { %v430_v38 = vrot.slane %v428_v19, 1  ;;  %v2047_v19 = vld [vmem:[%s2688_s3 + $0x1d8] sm:$0xff]  }
  0x26   : > { %1788 = vmatpush3.bf16.msra.mxu0 %v2024_v27  ;;  %v2316_v18 = vor.u32 %v423_v10, %v419_v1  ;;  %v2400_v13 = vpack.c.bf16 %v344_v26, %v2266_v53  ;;  %v2405_v17 = vmax.f32 %v330_v9, 0.0 }
  0x27   : > { %1828 = vmatpush3.bf16.msra.mxu1 %v2025_v28  ;;  %1789 = vmatprep.subr.bf16.mxu0 %v2026_v29  ;;  %v345_v28 = vmax.f32 %v325_v21, 0.0  ;;  %v2334_v29 = vmax.f32 %v326_v22, 0.0  ;;  %v2375_v58 = vor.u32 %v430_v38, %v426_v14  ;;  %v2044_v14 = vld [vmem:[%s2688_s3 + $0x120] sm:$0xff]   ;;  %v2046_v21 = vld [vmem:[%s2688_s3 + $0x158] sm:$0xff]  }
  0x28   : > { %1829 = vmatprep.subr.bf16.mxu1 %v2027_v31  ;;  %v1637_v27 = vcombine.low %v2297_v5, %v2316_v18  ;;  %v387_v31 = vsel %vm361_vm0, %v344_v26, 0.0  ;;  %v2049_v22 = vld [vmem:[%s2688_s3 + $0x198] sm:$0xff]  }
  0x29   : > { %v388_v34 = vsel %vm368_vm1, %v345_v28, 0.0  ;;  %v1758_v35 = vpack.c.bf16 %v2334_v29, %v344_v26  ;;  %v389_v12 = vsel %vm361_vm0, %v2334_v29, 0.0  ;;  %v2051_v28 = vld [vmem:[%s2688_s3 + $0x1d0] sm:$0xff]   ;;  %v1640_v37 = vcombine.low %v2316_v18, %v2375_v58  ;;  %v2065_v18 = vld [vmem:[%s2688_s3 + $0x220] sm:$0xff]  }
  0x2a   : > { %1790 = vmatpush3.bf16.msra.mxu0 %v2028_v32  ;;  %v477_v32 = vrot.slane %v2290_v0, 1  ;;  %1200 = vmatprep.mubr.bf16.mxu0 %v1637_v27  ;;  %v2348_v41 = vpack.c.bf16 %v388_v34, %v387_v31 }
  0x2b   : > { %1830 = vmatpush3.bf16.msra.mxu1 %v2029_v33  ;;  %1855 = vmatprep.subr.bf16.mxu0 %v2030_v45  ;;  %v2036_v33 = vld [vmem:[%s2688_s3 + $0x130] sm:$0xff]  }
  0x2c   : > { %1895 = vmatprep.subr.bf16.mxu1 %v2031_v50  ;;  %v274_v45 = vld [vmem:[%s2225_s18 + $0x50] sm:$0xff]  ;;  %v433_v46 = vshrl.u32 %v2348_v41, 16  ;;  %v435_v47 = vshll.u32 %v2348_v41, 16  ;;  %v478_v48 = vrot.slane %v2348_v41, 1  ;;  %v300_v50 = vmul.f32 %v2243_v39, %v273_v44  ;;  %v277_v44 = vld [vmem:[%s2225_s18 + $0x68] sm:$0x3] }
  0x2d   : > { %1201 = vmatmul.mubr.bf16.vlgmr.msra.gmra.mxu0 %v1636_v23  ;;  %v301_v55 = vmul.f32 %v2243_v39, %v274_v45  ;;  %v278_v45 = vld [vmem:[%s2225_s18 + $0x70] sm:$0xff]  ;;  %v304_v49 = vmul.f32 %v2243_v39, %v277_v44  ;;  %v2058_v44 = vld [vmem:[%s2688_s3 + $0x140] sm:$0xff]  }
  0x2e   : > { %1266 = vmatmul.mubr.bf16.vlgmr.msra.gmra.mxu1 %v1638_v15  ;;  %1856 = vmatpush3.bf16.msra.mxu0 %v2032_v20  ;;  %v437_v61 = vrot.slane %v435_v47, 1  ;;  %v2381_v1 = vcombine.low %v477_v32, %v478_v48  ;;  %v327_v3 = vadd.f32 %v2248_v40, %v300_v50  ;;  %v279_v47 = vld [vmem:[%s2225_s18 + $0x78] sm:$0x3]  ;;  %v305_v50 = vmul.f32 %v2243_v39, %v278_v45 }
  0x2f   : > { %1896 = vmatpush3.bf16.msra.mxu1 %v2033_v11  ;;  %1857 = vmatprep.subr.bf16.mxu0 %v2034_v24  ;;  %v328_v7 = vadd.f32 %v2248_v40, %v301_v55  ;;  %v306_v57 = vmul.f32 %v2243_v39, %v279_v47  ;;  %v2061_v47 = vld [vmem:[%s2688_s3 + $0x180] sm:$0xff]  }
  0x30   : > { %1897 = vmatprep.subr.bf16.mxu1 %v2035_v16  ;;  %1759 = vmatprep.mubr.msk.bf16.mxu1 %vm2280_vm2, %v1758_v35  ;;  %v2393_v10 = vor.u32 %v437_v61, %v433_v46  ;;  %v347_v11 = vmax.f32 %v327_v3, 0.0  ;;  %v349_v16 = vmax.f32 %v329_v8, 0.0  ;;  %v2048_v35 = vld [vmem:[%s2688_s3 + $0x118] sm:$0xff]   ;;  %v307_v61 = vmul.f32 %v2243_v39, %v280_v51  ;;  %v2055_v8 = vld [vmem:[%s2688_s3 + $0x1c8] sm:$0xff]  }
  0x31   : > { %v348_v15 = vmax.f32 %v328_v7, 0.0  ;;  %v331_v3 = vadd.f32 %v2248_v40, %v304_v49  ;;  %v393_v7 = vsel %vm361_vm0, %v2405_v17, 0.0 }
  0x32   : > { %1858 = vmatpush3.bf16.msra.mxu0 %v2036_v33  ;;  %v2412_v20 = vcombine.low %v2375_v58, %v2393_v10  ;;  %v390_v53 = vsel %vm368_vm1, %v347_v11, 0.0  ;;  %v392_v24 = vsel %vm368_vm1, %v349_v16, 0.0  ;;  %v333_v11 = vadd.f32 %v2248_v40, %v306_v57 }
  0x33   : > { %1898 = vmatpush3.bf16.msra.mxu1 %v2037_v25  ;;  %1859 = vmatprep.subr.bf16.mxu0 %v2038_v42  ;;  %v391_v23 = vsel %vm361_vm0, %v348_v15, 0.0  ;;  %v2426_v25 = vpack.c.bf16 %v390_v53, %v389_v12  ;;  %v1761_v26 = vpack.c.bf16 %v2405_v17, %v348_v15  ;;  %v2487_v16 = vpack.c.bf16 %v348_v15, %v2334_v29 }
  0x34   : > { %1899 = vmatprep.subr.bf16.mxu1 %v2039_v36  ;;  %1208 = vmatprep.mubr.bf16.mxu0 %v2412_v20  ;;  %v2430_v27 = vpack.c.bf16 %v392_v24, %v391_v23  ;;  %v2053_v36 = vld [vmem:[%s2688_s3 + $0x190] sm:$0xff]   ;;  %v353_v23 = vmax.f32 %v333_v11, 0.0 }
  0x35   : > { %1747 = vmatmul.mubr.msk.bf16.gmra.mxu0 %vm2280_vm2, %v2400_v13  ;;  %v440_v31 = vshrl.u32 %v2426_v25, 16  ;;  %v442_v33 = vshll.u32 %v2426_v25, 16  ;;  %v479_v34 = vrot.slane %v2426_v25, 1 }
  0x36   : > { %1274 = vmatmul.mubr.bf16.gmra.mxu1 %v2381_v1  ;;  %1860 = vmatpush3.bf16.msra.mxu0 %v2040_v52  ;;  %v447_v38 = vshrl.u32 %v2430_v27, 16  ;;  %v449_v42 = vshll.u32 %v2430_v27, 16  ;;  %v281_v52 = vld [vmem:[%s2225_s18 + $0x88] sm:$0x3] }
  0x37   : > { %1900 = vmatpush3.bf16.msra.mxu1 %v2041_v43  ;;  %1861 = vmatprep.subr.bf16.mxu0 %v2042_v2  ;;  %v480_v43 = vrot.slane %v2430_v27, 1  ;;  %v444_v46 = vrot.slane %v442_v33, 1  ;;  %v308_v12 = vmul.f32 %v2243_v39, %v281_v52  ;;  %v2057_v39 = vld [vmem:[%s2688_s3 + $0x188] sm:$0xff]   ;;  %v2062_v52 = vld [vmem:[%s2688_s3 + $0x238] sm:$0xff]   ;;  %v1647_v0 = vcombine.low %v478_v48, %v479_v34 }
  0x38   : > { %1901 = vmatprep.subr.bf16.mxu1 %v2043_v54  ;;  %1762 = vmatprep.mubr.msk.bf16.mxu1 %vm2280_vm2, %v1761_v26  ;;  %v451_v54 = vrot.slane %v449_v42, 1  ;;  %v2054_v26 = vld [vmem:[%s2688_s3 + $0x148] sm:$0xff]  }
  0x39   : > { %v2463_v55 = vcombine.low %v479_v34, %v480_v43  ;;  %v2470_v2 = vor.u32 %v444_v46, %v440_v31  ;;  %v396_v31 = vsel %vm368_vm1, %v353_v23, 0.0 }
  0x3a   : > { %1862 = vmatpush3.bf16.msra.mxu0 %v2044_v14  ;;  %v2480_v9 = vor.u32 %v451_v54, %v447_v38  ;;  %v334_v14 = vadd.f32 %v2248_v40, %v307_v61  ;;  %v2056_v38 = vld [vmem:[%s2688_s3 + $0x108] sm:$0xff]  }
  0x3b   : > { %1902 = vmatpush3.bf16.msra.mxu1 %v2045_v4  ;;  %1863 = vmatprep.subr.bf16.mxu0 %v2046_v21  ;;  %v332_v4 = vadd.f32 %v2248_v40, %v305_v50  ;;  %v1646_v41 = vcombine.low %v2393_v10, %v2470_v2  ;;  %v2067_v10 = vld [vmem:[%s2688_s3 + $0x210] sm:$0xff]  }
  0x3c   : > { %1903 = vmatprep.subr.bf16.mxu1 %v2047_v19  ;;  %v351_v19 = vmax.f32 %v331_v3, 0.0  ;;  %v1649_v21 = vcombine.low %v2470_v2, %v2480_v9  ;;  %v354_v24 = vmax.f32 %v334_v14, 0.0  ;;  %v2060_v3 = vld [vmem:[%s2688_s3 + $0x100] sm:$0xff]  }
  0x3d   : > { %v352_v53 = vmax.f32 %v332_v4, 0.0 }
  0x3e   : > { %1282 = vmatmul.mubr.bf16.gmra.mxu1 %v2463_v55  ;;  %1864 = vmatpush3.bf16.msra.mxu0 %v2048_v35  ;;  %v394_v29 = vsel %vm368_vm1, %v351_v19, 0.0  ;;  %v335_v35 = vadd.f32 %v2248_v40, %v308_v12  ;;  %v397_v12 = vsel %vm361_vm0, %v354_v24, 0.0  ;;  %v1641_v19 = vcombine.low %v476_v6, %v477_v32  ;;  %v2064_v6 = vld [vmem:[%s2688_s3 + $0x228] sm:$0xff]  }
  0x3f   : > { %1904 = vmatpush3.bf16.msra.mxu1 %v2049_v22  ;;  %1865 = vmatprep.subr.bf16.mxu0 %v2050_v56  ;;  %v2052_v22 = vld [vmem:[%s2688_s3 + $0x110] sm:$0xff]   ;;  %v395_v15 = vsel %vm361_vm0, %v352_v53, 0.0  ;;  %v2509_v33 = vpack.c.bf16 %v394_v29, %v393_v7 }
  0x40   : > { %1905 = vmatprep.subr.bf16.mxu1 %v2051_v28  ;;  %v2059_v28 = vld [vmem:[%s2688_s3 + $0x1c0] sm:$0xff]   ;;  %1216 = vmatprep.mubr.bf16.mxu0 %v1649_v21  ;;  %v2518_v42 = vpack.c.bf16 %v396_v31, %v395_v15  ;;  %v355_v56 = vmax.f32 %v335_v35, 0.0 }
  0x41   : > { %1750 = vmatmul.mubr.msk.bf16.gmra.mxu0 %vm2280_vm2, %v2487_v16  ;;  %v454_v45 = vshrl.u32 %v2509_v33, 16  ;;  %v456_v40 = vshll.u32 %v2509_v33, 16  ;;  %v481_v46 = vrot.slane %v2509_v33, 1 }
  0x42   : > { %1866 = vmatpush3.bf16.msra.mxu0 %v2052_v22  ;;  %v461_v49 = vshrl.u32 %v2518_v42, 16  ;;  %v463_v50 = vshll.u32 %v2518_v42, 16  ;;  %v482_v51 = vrot.slane %v2518_v42, 1  ;;  %v398_v14 = vsel %vm368_vm1, %v355_v56, 0.0 }
  0x43   : > { %1906 = vmatpush3.bf16.msra.mxu1 %v2053_v36  ;;  %v1764_v36 = vpack.c.bf16 %v354_v24, %v352_v53  ;;  %1867 = vmatprep.subr.bf16.mxu0 %v2054_v26  ;;  %v458_v54 = vrot.slane %v456_v40, 1  ;;  %v1653_v58 = vcombine.low %v480_v43, %v481_v46  ;;  %v2068_v43 = vld [vmem:[%s2688_s3 + $0x208] sm:$0xff]  }
  0x44   : > { %1907 = vmatprep.subr.bf16.mxu1 %v2055_v8  ;;  %v465_v57 = vrot.slane %v463_v50, 1  ;;  %v2539_v61 = vcombine.low %v481_v46, %v482_v51  ;;  %v1752_v8 = vpack.c.bf16 %v352_v53, %v2405_v17  ;;  %v2561_v17 = vpack.c.bf16 %v398_v14, %v397_v12 }
  0x45   : > { %1765 = vmatprep.mubr.msk.bf16.mxu1 %vm2280_vm2, %v1764_v36  ;;  %v2544_v4 = vor.u32 %v458_v54, %v454_v45 }
  0x46   : > { %1868 = vmatpush3.bf16.msra.mxu0 %v2056_v38  ;;  %v2546_v7 = vor.u32 %v465_v57, %v461_v49  ;;  %1290 = vmatmul.mubr.bf16.gmra.mxu1 %v2539_v61  ;;  %v486_v60 = vshll.u32 %v2561_v17, 16  ;;  %v484_v32 = vshrl.u32 %v2561_v17, 16  ;;  %v491_v34 = vrot.slane %v2561_v17, 1 }
  0x47   : > { %1908 = vmatpush3.bf16.msra.mxu1 %v2057_v39  ;;  %1869 = vmatprep.subr.bf16.mxu0 %v2058_v44  ;;  %v1652_v27 = vcombine.low %v2480_v9, %v2544_v4  ;;  %v1660_v2 = vcombine.low %v2561_v17, %v2078_v62 }
  0x48   : > { %1909 = vmatprep.subr.bf16.mxu1 %v2059_v28  ;;  %1395 = vmatprep.mubr.bf16.mxu1 %v2412_v20  ;;  %v1655_v11 = vcombine.low %v2544_v4, %v2546_v7  ;;  %v2066_v20 = vld [vmem:[%s2688_s3 + $0x218] sm:$0xff]   ;;  %v1662_v62 = vcombine.low %v491_v34, %v2288_v63 }
  0x4a   : > { %1870 = vmatpush3.bf16.msra.mxu0 %v2060_v3  ;;  %1224 = vmatprep.mubr.bf16.mxu0 %v1655_v11 }
  0x4b   : > { %1910 = vmatpush3.bf16.msra.mxu1 %v2061_v47  ;;  %1947 = vmatprep.subr.bf16.mxu0 %v2062_v52 }
  0x4c   : > { %1971 = vmatprep.subr.bf16.mxu1 %v2062_v52  ;;  %1753 = vmatmul.mubr.msk.bf16.gmra.mxu0 %vm2280_vm2, %v1752_v8 }
  0x4d   : > { %1330 = vmatprep.mubr.bf16.mxu0 %v1641_v19 }
  0x4e   : > { %1768 = vmatmul.mubr.msk.bf16.vlgmr.msra.gmra.mxu1 %vm2280_vm2, %v2400_v13  ;;  %v488_v13 = vrot.slane %v486_v60, 1 }
  0x4f   : > { %1979 = vmatpush3.bf16.msra.mxu1 %v2062_v52  ;;  %1403 = vmatprep.mubr.bf16.mxu1 %v1649_v21 }
  0x50   : > { %1972 = vmatprep.subr.bf16.mxu1 %v2063_v30  ;;  %v489_v48 = vor.u32 %v488_v13, %v484_v32 }
  0x52   : > { %v1661_v25 = vcombine.low %v489_v48, %v2297_v5  ;;  %v1659_v5 = vcombine.low %v482_v51, %v491_v34  ;;  %v1658_v9 = vcombine.low %v2546_v7, %v489_v48 }
  0x53   : > { %1980 = vmatpush3.bf16.msra.mxu1 %v2063_v30 }
  0x54   : > { %1331 = vmatmul.mubr.bf16.vlgmr.msra.gmra.mxu0 %v1640_v37  ;;  %1973 = vmatprep.subr.bf16.mxu1 %v2064_v6 }
  0x55   : > { %1948 = vmatpush3.bf16.msra.mxu0 %v2062_v52  ;;  %1338 = vmatprep.mubr.bf16.mxu0 %v1647_v0 }
  0x56   : > { %1949 = vmatprep.subr.bf16.mxu0 %v2063_v30  ;;  %1771 = vmatmul.mubr.msk.bf16.gmra.mxu1 %vm2280_vm2, %v2487_v16 }
  0x57   : > { %1981 = vmatpush3.bf16.msra.mxu1 %v2064_v6  ;;  %1411 = vmatprep.mubr.bf16.mxu1 %v1655_v11 }
  0x58   : > { %1974 = vmatprep.subr.bf16.mxu1 %v2065_v18 }
  0x59   : > { %1950 = vmatpush3.bf16.msra.mxu0 %v2063_v30 }
  0x5a   : > { %1951 = vmatprep.subr.bf16.mxu0 %v2064_v6 }
  0x5b   : > { %1982 = vmatpush3.bf16.msra.mxu1 %v2065_v18 }
  0x5c   : > { %1339 = vmatmul.mubr.bf16.gmra.mxu0 %v1646_v41  ;;  %1975 = vmatprep.subr.bf16.mxu1 %v2066_v20 }
  0x5d   : > { %1952 = vmatpush3.bf16.msra.mxu0 %v2064_v6  ;;  %1346 = vmatprep.mubr.bf16.mxu0 %v1653_v58  ;;  %v1635_v58 = vld [vmem:[%s2689_s4] ss:$0 sm:$0xff] }
  0x5e   : > { %1953 = vmatprep.subr.bf16.mxu0 %v2065_v18  ;;  %1774 = vmatmul.mubr.msk.bf16.gmra.mxu1 %vm2280_vm2, %v1752_v8 }
  0x5f   : > { %1983 = vmatpush3.bf16.msra.mxu1 %v2066_v20  ;;  %1419 = vmatprep.mubr.bf16.mxu1 %v1661_v25 }
  0x60   : > { %1976 = vmatprep.subr.bf16.mxu1 %v2067_v10 }
  0x61   : > { %1954 = vmatpush3.bf16.msra.mxu0 %v2065_v18 }
  0x62   : > { %1955 = vmatprep.subr.bf16.mxu0 %v2066_v20 }
  0x63   : > { %1984 = vmatpush3.bf16.msra.mxu1 %v2067_v10 }
  0x64   : > { %1347 = vmatmul.mubr.bf16.gmra.mxu0 %v1652_v27  ;;  %1977 = vmatprep.subr.bf16.mxu1 %v2068_v43 }
  0x65   : > { %1956 = vmatpush3.bf16.msra.mxu0 %v2066_v20  ;;  %1354 = vmatprep.mubr.bf16.mxu0 %v1659_v5 }
  0x66   : > { %1957 = vmatprep.subr.bf16.mxu0 %v2067_v10  ;;  %1420 = vmatmul.mubr.bf16.gmra.mxu1 %v1660_v2 }
  0x67   : > { %1985 = vmatpush3.bf16.msra.mxu1 %v2068_v43  ;;  %1967 = vmatprep.mubr.bf16.mxu1 %v2539_v61 }
  0x68   : > { %1978 = vmatprep.subr.bf16.mxu1 %v2069_v59 }
  0x69   : > { %1958 = vmatpush3.bf16.msra.mxu0 %v2067_v10 }
  0x6a   : > { %1959 = vmatprep.subr.bf16.mxu0 %v2068_v43 }
  0x6b   : > { %1986 = vmatpush3.bf16.msra.mxu1 %v2069_v59 }
  0x6c   : > { %1355 = vmatmul.mubr.bf16.gmra.mxu0 %v1658_v9 }
  0x6d   : > { %1960 = vmatpush3.bf16.msra.mxu0 %v2068_v43  ;;  %1963 = vmatprep.mubr.bf16.mxu0 %v2381_v1 }
  0x6e   : > { %1961 = vmatprep.subr.bf16.mxu0 %v2069_v59  ;;  %1968 = vmatmul.mubr.bf16.vlgmr.msra.gmra.mxu1 %v1662_v62 }
  0x71   : > { %1962 = vmatpush3.bf16.msra.mxu0 %v2069_v59 }
  0x74   : > { %1964 = vmatmul.mubr.bf16.vlgmr.msra.gmra.mxu0 %v2463_v55 }
  0xed   : > { %v1791_v21 = vpop.f32.mrf.mxu0 }
  0xee   : > { %v1831_v16 = vpop.f32.mrf.mxu1 }
  0xef   : > { %v1792_v23 = vpop.f32.mrf.mxu0 }
  0xf0   : > { %v1832_v53 = vpop.f32.mrf.mxu1  ;;  %v1793_v18 = vadd.f32 %v1792_v23, %v1791_v21 }
  0xf1   : > { %v1794_v39 = vpop.f32.mrf.mxu0  ;;  %v1833_v43 = vadd.f32 %v1832_v53, %v1831_v16 }
  0xf2   : > { %v2619_v22 = vpop.f32.mrf.mxu1  ;;  %v1203_v5 = vadd.f32 %v1793_v18, %v1635_v58 }
  0xf3   : > { %v1795_v29 = vpop.f32.mrf.mxu0 }
  0xf4   : > { %v2621_v24 = vpop.f32.mrf.mxu1  ;;  %v1796_v62 = vadd.f32 %v1795_v29, %v1794_v39 }
  0xf5   : > { %v1797_v1 = vpop.f32.mrf.mxu0 }
  0xf6   : > { %v1837_v63 = vpop.f32.mrf.mxu1 }
  0xf7   : > { %v1798_v31 = vpop.f32.mrf.mxu0 }
  0xf8   : > { %v1838_v15 = vpop.f32.mrf.mxu1  ;;  %v1799_v20 = vadd.f32 %v1798_v31, %v1797_v1 }
  0xf9   : > { %v1800_v33 = vpop.f32.mrf.mxu0 }
  0xfa   : > { %v2623_v26 = vpop.f32.mrf.mxu1 }
  0xfb   : > { %v1801_v35 = vpop.f32.mrf.mxu0 }
  0xfc   : > { %v2625_v28 = vpop.f32.mrf.mxu1  ;;  %v1802_v1 = vadd.f32 %v1801_v35, %v1800_v33 }
  0xfe   : > { %v1843_v55 = vpop.f32.mrf.mxu1 }
 0x100   : > { %v1844_v36 = vpop.f32.mrf.mxu1 }
 0x101   : > { %v1803_v42 = vpop.f32.mrf.mxu0  ;;  %v1845_v59 = vadd.f32 %v1844_v36, %v1843_v55  ;;  %v1206_v36 = vadd.f32 %v1796_v62, %v1635_v58 }
 0x102   : > { %v1846_v38 = vpop.f32.mrf.mxu1 }
 0x103   : > { %v1804_v44 = vpop.f32.mrf.mxu0 }
 0x104   : > { %v1847_v45 = vpop.f32.mrf.mxu1  ;;  %v1805_v41 = vadd.f32 %v1804_v44, %v1803_v42 }
 0x105   : > { %v1806_v40 = vpop.f32.mrf.mxu0 }
 0x106   : > { %v1849_v46 = vpop.f32.mrf.mxu1  ;;  %v1219_v2 = vadd.f32 %v1805_v41, %v1635_v58 }
 0x107   : > { %v1807_v47 = vpop.f32.mrf.mxu0 }
 0x108   : > { %v1850_v49 = vpop.f32.mrf.mxu1  ;;  %v1808_v34 = vadd.f32 %v1807_v47, %v1806_v40  ;;  %v1268_v47 = vadd.f32 %v1833_v43, %v1203_v5  ;;  %v1284_v18 = vadd.f32 %v1845_v59, %v1219_v2 }
 0x10a   : > { %v2627_v50 = vpop.f32.mrf.mxu1  ;;  %v1222_v31 = vadd.f32 %v1808_v34, %v1635_v58 }
 0x10c   : > { %v1809_v51 = vpop.f32.mrf.mxu0  ;;  %v2629_v52 = vpop.f32.mrf.mxu1 }
 0x10d   : > { %v1854_v35 = vadd.f32 %v2629_v52, %v2627_v50 }
 0x10e   : > { %v1810_v54 = vpop.f32.mrf.mxu0  ;;  %v2631_v56 = vpop.f32.mrf.mxu1 }
 0x10f   : > { %v1811_v21 = vadd.f32 %v1810_v54, %v1809_v51 }
 0x110   : > { %v1812_v57 = vpop.f32.mrf.mxu0  ;;  %v2633_v61 = vpop.f32.mrf.mxu1 }
 0x111   : > { %v1227_v29 = vadd.f32 %v1811_v21, %v1635_v58 }
 0x112   : > { %v1813_v3 = vpop.f32.mrf.mxu0  ;;  %v2635_v4 = vpop.f32.mrf.mxu1 }
 0x113   : > { %2694 = vst [vmem:[#allocation2_spill] sm:$0xff] %v2635_v4  ;;  %v1839_v4 = vadd.f32 %v1838_v15, %v1837_v63  ;;  %v1814_v16 = vadd.f32 %v1813_v3, %v1812_v57  ;;  %v1851_v63 = vadd.f32 %v1850_v49, %v1849_v46  ;;  %v1913_v46 = vadd.f32 %v2633_v61, %v2631_v56 }
 0x114   : > { %v1871_v7 = vpop.f32.mrf.mxu0  ;;  %v2637_v8 = vpop.f32.mrf.mxu1 }
 0x115   : > { %2695 = vst [vmem:[#allocation3_spill] sm:$0xff] %v2637_v8  ;;  %v1211_v8 = vadd.f32 %v1799_v20, %v1635_v58 }
 0x116   : > { %v1872_v11 = vpop.f32.mrf.mxu0  ;;  %v1917_v12 = vpop.f32.mrf.mxu1 }
 0x117   : > { %v1276_v39 = vadd.f32 %v1839_v4, %v1211_v8  ;;  %v1873_v51 = vadd.f32 %v1872_v11, %v1871_v7  ;;  %v1292_v4 = vadd.f32 %v1851_v63, %v1227_v29 }
 0x118   : > { %v2639_v14 = vpop.f32.mrf.mxu0  ;;  %v1918_v19 = vpop.f32.mrf.mxu1 }
 0x119   : > { %v1919_v57 = vadd.f32 %v1918_v19, %v1917_v12 }
 0x11a   : > { %v2641_v17 = vpop.f32.mrf.mxu0  ;;  %v2643_v30 = vpop.f32.mrf.mxu1 }
 0x11b   : > { %2696 = vst [vmem:[#allocation4_spill] sm:$0xff] %v2643_v30  ;;  %v1848_v30 = vadd.f32 %v1847_v45, %v1846_v38  ;;  %v1230_v45 = vadd.f32 %v1814_v16, %v1635_v58 }
 0x11c   : > { %v1877_v37 = vpop.f32.mrf.mxu0  ;;  %v2645_v60 = vpop.f32.mrf.mxu1 }
 0x11d   : > { %2697 = vst [vmem:[#allocation5_spill] sm:$0xff] %v2645_v60  ;;  %v1836_v60 = vadd.f32 %v2621_v24, %v2619_v22  ;;  %v1214_v22 = vadd.f32 %v1802_v1, %v1635_v58  ;;  %v1842_v24 = vadd.f32 %v2625_v28, %v2623_v26  ;;  %v1287_v33 = vadd.f32 %v1848_v30, %v1222_v31 }
 0x11e   : > { %v1878_v0 = vpop.f32.mrf.mxu0  ;;  %v1923_v6 = vpop.f32.mrf.mxu1  ;;  %v1295_v12 = vadd.f32 %v1854_v35, %v1230_v45 }
 0x11f   : > { %v1879_v53 = vadd.f32 %v1878_v0, %v1877_v37  ;;  %v1333_v0 = vadd.f32 %v1873_v51, %v1268_v47  ;;  %v1271_v52 = vadd.f32 %v1836_v60, %v1206_v36  ;;  %v2700_v60 = vld [vmem:[#allocation2_spill] sm:$0xff] }
 0x120   : > { %v1880_v32 = vpop.f32.mrf.mxu0  ;;  %v1924_v13 = vpop.f32.mrf.mxu1 }
 0x121   : > { %v1925_v41 = vadd.f32 %v1924_v13, %v1923_v6  ;;  %v1341_v49 = vadd.f32 %v1879_v53, %v1276_v39  ;;  %v1279_v6 = vadd.f32 %v1842_v24, %v1214_v22  ;;  %v1876_v13 = vadd.f32 %v2641_v17, %v2639_v14 }
 0x122   : > { %v1881_v48 = vpop.f32.mrf.mxu0  ;;  %v1926_v25 = vpop.f32.mrf.mxu1  ;;  %v2698_v19 = vld [vmem:[#allocation4_spill] sm:$0xff]  ;;  %v1398_v62 = vadd.f32 %v1913_v46, %v1333_v0 }
 0x123   : > { %v1882_v7 = vadd.f32 %v1881_v48, %v1880_v32  ;;  %v1406_v34 = vadd.f32 %v1919_v57, %v1341_v49 }
 0x124   : > { %v1883_v10 = vpop.f32.mrf.mxu0  ;;  %v1927_v27 = vpop.f32.mrf.mxu1  ;;  %v2699_v58 = vld [vmem:[#allocation5_spill] sm:$0xff] }
 0x125   : > { %v1928_v28 = vadd.f32 %v1927_v27, %v1926_v25  ;;  %v1922_v32 = vadd.f32 %v2699_v58, %v2698_v19  ;;  %v1344_v43 = vadd.f32 %v1882_v7, %v1279_v6  ;;  %v2701_v27 = vld [vmem:[#allocation3_spill] sm:$0xff] }
 0x126   : > { %v1884_v9 = vpop.f32.mrf.mxu0  ;;  %v1929_v23 = vpop.f32.mrf.mxu1  ;;  %v1916_v59 = vadd.f32 %v2701_v27, %v2700_v60 }
 0x127   : > { %v1885_v42 = vadd.f32 %v1884_v9, %v1883_v10  ;;  %v1409_v16 = vadd.f32 %v1922_v32, %v1344_v43 }
 0x128   : > { %v1886_v44 = vpop.f32.mrf.mxu0  ;;  %v1930_v40 = vpop.f32.mrf.mxu1 }
 0x129   : > { %v1349_v54 = vadd.f32 %v1885_v42, %v1284_v18  ;;  %v1931_v11 = vadd.f32 %v1930_v40, %v1929_v23  ;;  %v1336_v23 = vadd.f32 %v1876_v13, %v1271_v52 }
 0x12a   : > { %v1887_v55 = vpop.f32.mrf.mxu0  ;;  %v1932_v15 = vpop.f32.mrf.mxu1 }
 0x12b   : > { %v1888_v20 = vadd.f32 %v1887_v55, %v1886_v44  ;;  %v1414_v50 = vadd.f32 %v1925_v41, %v1349_v54  ;;  %v1401_v29 = vadd.f32 %v1916_v59, %v1336_v23 }
 0x12c   : > { %v1889_v10 = vpop.f32.mrf.mxu0  ;;  %v1933_v38 = vpop.f32.mrf.mxu1 }
 0x12d   : > { %v1352_v26 = vadd.f32 %v1888_v20, %v1287_v33  ;;  %v1934_v25 = vadd.f32 %v1933_v38, %v1932_v15 }
 0x12e   : > { %v1890_v3 = vpop.f32.mrf.mxu0  ;;  %v1969_v37 = vpop.f32.mrf.mxu1 }
 0x12f   : > { %v1891_v8 = vadd.f32 %v1890_v3, %v1889_v10  ;;  %v1417_v21 = vadd.f32 %v1928_v28, %v1352_v26 }
 0x130   : > { %v1892_v30 = vpop.f32.mrf.mxu0  ;;  %v1478_v61 = vpop.f32.mrf.mxu1 }
 0x131   : > { %v1357_v56 = vadd.f32 %v1891_v8, %v1292_v4  ;;  %v1479_v5 = vadd.f32 %v1478_v61, %v1414_v50 }
 0x132   : > { %v1893_v48 = vpop.f32.mrf.mxu0  ;;  %v1970_v17 = vpop.f32.mrf.mxu1 }
 0x133   : > { %v1894_v2 = vadd.f32 %v1893_v48, %v1892_v30  ;;  %v1422_v14 = vadd.f32 %v1931_v11, %v1357_v56  ;;  %1497 = vst [vmem:[%s2666_s28 + $0x20] sm:$0xff] %v1479_v5  ;;  %v1518_v38 = vmul.f32 %v1479_v5, %v1479_v5 }
 0x134   : > { %v1965_v9 = vpop.f32.mrf.mxu0  ;;  %v1481_v31 = vpop.f32.mrf.mxu1 }
 0x135   : > { %v1360_v42 = vadd.f32 %v1894_v2, %v1295_v12  ;;  %v1471_v44 = vadd.f32 %v1965_v9, %v1406_v34  ;;  %v1487_v1 = vadd.f32 %v1969_v37, %v1422_v14  ;;  %v1482_v47 = vadd.f32 %v1481_v31, %v1417_v21 }
 0x136   : > { %v1462_v40 = vpop.f32.mrf.mxu0 }
 0x137   : > { %1495 = vst [vmem:[%s2666_s28 + $0x10] sm:$0xff] %v1471_v44  ;;  %1499 = vst [vmem:[%s2666_s28 + $0x30] sm:$0xff] %v1487_v1  ;;  %v1463_v18 = vadd.f32 %v1462_v40, %v1398_v62  ;;  %v1425_v53 = vadd.f32 %v1934_v25, %v1360_v42  ;;  %v1516_v20 = vmul.f32 %v1471_v44, %v1471_v44 }
 0x138   : > { %v1966_v55 = vpop.f32.mrf.mxu0  ;;  %1498 = vst [vmem:[%s2666_s28 + $0x28] sm:$0xff] %v1482_v47  ;;  %v1519_v57 = vmul.f32 %v1482_v47, %v1482_v47  ;;  %v1520_v4 = vmul.f32 %v1487_v1, %v1487_v1 }
 0x139   : > { %1493 = vst [vmem:[%s2666_s28] sm:$0xff] %v1463_v18  ;;  %v1474_v36 = vadd.f32 %v1966_v55, %v1409_v16  ;;  %v1490_v39 = vadd.f32 %v1970_v17, %v1425_v53  ;;  %v1514_v51 = vmul.f32 %v1463_v18, %v1463_v18 }
 0x13a   : > { %v1465_v63 = vpop.f32.mrf.mxu0 }
 0x13b   : > { %1496 = vst [vmem:[%s2666_s28 + $0x18] sm:$0xff] %v1474_v36  ;;  %1500 = vst [vmem:[%s2666_s28 + $0x38] sm:$0xff] %v1490_v39  ;;  %v1466_v15 = vadd.f32 %v1465_v63, %v1401_v29  ;;  %v1517_v24 = vmul.f32 %v1474_v36, %v1474_v36  ;;  %v1521_v11 = vmul.f32 %v1490_v39, %v1490_v39 }
 0x13d   : > { %1494 = vst [vmem:[%s2666_s28 + $0x8] sm:$0xff] %v1466_v15  ;;  %v1501_v54 = vadd.f32 %v1466_v15, %v1463_v18  ;;  %v1515_v41 = vmul.f32 %v1466_v15, %v1466_v15 }
 0x13f   : > { %v1502_v10 = vadd.f32 %v1501_v54, %v1471_v44  ;;  %v1522_v22 = vadd.f32 %v1515_v41, %v1514_v51 }
 0x141   : > { %v1523_v33 = vadd.f32 %v1522_v22, %v1516_v20  ;;  %v1503_v35 = vadd.f32 %v1502_v10, %v1474_v36 }
 0x143   : > { %v1504_v45 = vadd.f32 %v1503_v35, %v1479_v5  ;;  %v1524_v46 = vadd.f32 %v1523_v33, %v1517_v24 }
 0x145   : > { %v1505_v49 = vadd.f32 %v1504_v45, %v1482_v47  ;;  %v1525_v3 = vadd.f32 %v1524_v46, %v1518_v38 }
 0x147   : > { %v1506_v7 = vadd.f32 %v1505_v49, %v1487_v1  ;;  %v1526_v8 = vadd.f32 %v1525_v3, %v1519_v57 }
 0x149   : > { %v1507_v37 = vadd.f32 %v1506_v7, %v1490_v39  ;;  %v1527_v0 = vadd.f32 %v1526_v8, %v1520_v4 }
 0x14b   : > { %v1508_v26 = vrot.slane %v1507_v37, 4  ;;  %v1528_v28 = vadd.f32 %v1527_v0, %v1521_v11 }
 0x14d   : > { %v1509_v30 = vadd.f32 %v1508_v26, %v1507_v37  ;;  %v1529_v50 = vrot.slane %v1528_v28, 4 }
 0x14f   : > { %v1510_v52 = vrot.slane %v1509_v30, 2  ;;  %v1530_v6 = vadd.f32 %v1529_v50, %v1528_v28 }
 0x151   : > { %v1511_v13 = vadd.f32 %v1510_v52, %v1509_v30  ;;  %v1531_v56 = vrot.slane %v1530_v6, 2 }
 0x153   : > { %v1512_v61 = vrot.slane %v1511_v13, 1  ;;  %v1532_v12 = vadd.f32 %v1531_v56, %v1530_v6 }
 0x155   : > { %v1533_v19 = vrot.slane %v1532_v12, 1  ;;  %v1513_v58 = vadd.f32 %v1512_v61, %v1511_v13 }
 0x157   : > { %v1534_v32 = vadd.f32 %v1533_v19, %v1532_v12 }
 0x159   : > { %v1536_v48 = vsel %vm1535_vm3, %v1513_v58, %v1534_v32 }
 0x15a   : > { %1537 = vst [vmem:[%s262_s8] sm:$0x3] %v1536_v48 }
 0x15b PF: > { %s17_s21 = sadd.s32 1, %s2076_s21  }
 0x15c   : > { %p14_p4 = scmp.ge.s32.totalorder %s17_s21, 4  }
 0x15e   :  { %16 = sbr.rel (!%p14_p4) target bundleno = 1 (0x1), region = 82 }

</bundles_post_ra>
